<compile_context>
chip_gen: v7x
topology: tpu7x:2x2x1
jax: 0.10.0
libtpu: 0.0.40
codegen_flags: <defaults>
</compile_context>

<pallas_src>
import functools

import jax
import jax.numpy as jnp
from jax import lax
from jax.experimental import pallas as pl
from jax.experimental.pallas import tpu as pltpu


def _round_up(x, m):
    return (x + m - 1) // m * m


_VMEM_LIMIT = 48 * 1024 * 1024   # leaves headroom even on v7x (64 MiB physical / TC)
_EPS_BN = 1e-5                   # BatchNorm1d default eps
_EPS_NORM_SQ = 1e-24             # == (1e-12)^2 clamp of F.normalize


# --------------------------------------------------------------------------- #
# Fused path: one kernel, grid = (phase, batch_tile).
#   phase 0: h, x1 -> VMEM scratch, accumulate BN sum / sum-of-squares
#   phase 1: BN apply + GLU + L2 normalize -> output
# --------------------------------------------------------------------------- #
def _fused_kernel(x_ref, w1_ref, b1_ref, w2_ref, b2_ref, gamma_ref, beta_ref,
                  o_ref, h_scr, x1_scr, stats_scr,
                  *, batch, tm, matmul_dtype):
    phase = pl.program_id(0)
    i = pl.program_id(1)
    start = pl.multiple_of(i * tm, 8)

    @pl.when((phase == 0) & (i == 0))
    def _():
        stats_scr[...] = jnp.zeros_like(stats_scr)

    @pl.when(phase == 0)
    def _():
        x = x_ref[...].astype(matmul_dtype)
        # fc: (tm, Din) @ (Din, Dout) + b1   (f32 accumulate on the MXU)
        h = jnp.dot(x, w1_ref[...], preferred_element_type=jnp.float32) + b1_ref[...]
        # cg.fc: (tm, Dout) @ (Dout, Dout) + b2
        x1 = jnp.dot(h.astype(matmul_dtype), w2_ref[...],
                     preferred_element_type=jnp.float32) + b2_ref[...]
        h_scr[pl.ds(start, tm), :] = h
        x1_scr[pl.ds(start, tm), :] = x1
        # Full-batch BN statistics; mask rows belonging to the partial last tile.
        row = i * tm + lax.broadcasted_iota(jnp.int32, (tm, 1), 0)
        x1m = jnp.where(row < batch, x1, 0.0)
        stats_scr[0:1, :] += jnp.sum(x1m, axis=0, keepdims=True)
        stats_scr[1:2, :] += jnp.sum(x1m * x1m, axis=0, keepdims=True)

    @pl.when(phase == 1)
    def _():
        h = h_scr[pl.ds(start, tm), :]
        x1 = x1_scr[pl.ds(start, tm), :]
        inv_n = jnp.float32(1.0 / batch)
        mean = stats_scr[0:1, :] * inv_n
        var = jnp.maximum(stats_scr[1:2, :] * inv_n - mean * mean, 0.0)  # biased var
        scale = gamma_ref[...] * lax.rsqrt(var + _EPS_BN)
        shift = beta_ref[...] - mean * scale
        # GLU(cat([h, x1n], -1)) == h * sigmoid(x1n)
        g = h * jax.nn.sigmoid(x1 * scale + shift)
        # F.normalize: g / max(||g||, 1e-12) == g * rsqrt(max(sum(g^2), 1e-24))
        ss = jnp.sum(g * g, axis=-1, keepdims=True)
        o_ref[...] = (g * lax.rsqrt(jnp.maximum(ss, _EPS_NORM_SQ))).astype(o_ref.dtype)


# --------------------------------------------------------------------------- #
# Two-pass path, stage 1: matmuls + per-core partial BN stats (grid = (core, tile)).
# Only h is written back (x1 is recomputed in stage 2).
# --------------------------------------------------------------------------- #
def _stage1_kernel(x_ref, w1_ref, b1_ref, w2_ref, b2_ref,
                   h_ref, stats_ref,
                   *, batch, tm, tiles_per_core, matmul_dtype):
    c = pl.program_id(0)
    j = pl.program_id(1)

    @pl.when(j == 0)
    def _():
        stats_ref[...] = jnp.zeros_like(stats_ref)

    x = x_ref[...].astype(matmul_dtype)
    h = jnp.dot(x, w1_ref[...], preferred_element_type=jnp.float32) + b1_ref[...]
    x1 = jnp.dot(h.astype(matmul_dtype), w2_ref[...],
                 preferred_element_type=jnp.float32) + b2_ref[...]
    h_ref[...] = h.astype(h_ref.dtype)

    # Un-clamped global tile index: rows of duplicate/padded tiles mask to zero.
    gi = c * tiles_per_core + j
    row = gi * tm + lax.broadcasted_iota(jnp.int32, (tm, 1), 0)
    x1m = jnp.where(row < batch, x1, 0.0)
    stats_ref[0:1, :] += jnp.sum(x1m, axis=0, keepdims=True)
    stats_ref[1:2, :] += jnp.sum(x1m * x1m, axis=0, keepdims=True)


# --------------------------------------------------------------------------- #
# Two-pass path, stage 2: recompute x1 (W2 resident), BN apply + GLU + normalize.
# --------------------------------------------------------------------------- #
def _stage2_kernel(h_ref, w2_ref, b2_ref, scale_ref, shift_ref, o_ref):
    h = h_ref[...].astype(jnp.float32)
    x1 = jnp.dot(h_ref[...], w2_ref[...],
                 preferred_element_type=jnp.float32) + b2_ref[...]
    g = h * jax.nn.sigmoid(x1 * scale_ref[...] + shift_ref[...])
    ss = jnp.sum(g * g, axis=-1, keepdims=True)
    o_ref[...] = (g * lax.rsqrt(jnp.maximum(ss, _EPS_NORM_SQ))).astype(o_ref.dtype)


# --------------------------------------------------------------------------- #
# Wrapper
# --------------------------------------------------------------------------- #
def _geu_impl(x, w1, b1, w2, b2, gamma, beta, *,
              block_rows, matmul_dtype, out_dtype, fuse_vmem_budget,
              force_two_pass):
    B, Din = x.shape
    Dout = w1.shape[1]
    dout_p = _round_up(Dout, 128)
    f32 = jnp.float32
    md = jnp.dtype(matmul_dtype)
    out_dt = jnp.dtype(out_dtype)

    # Row-tile size: multiple of 16 keeps bf16 intermediates sublane-aligned.
    tm = min(_round_up(block_rows, 16), _round_up(B, 16))
    n_tiles = pl.cdiv(B, tm)

    # Pad the feature axis to a lane-dense multiple of 128; weights are pre-cast
    # to the matmul dtype (half the resident VMEM / DMA, no per-step cast).
    # Biases / BN affine stay f32 (applied after the f32 accumulate).
    w1_p = jnp.zeros((Din, dout_p), md).at[:, :Dout].set(w1.astype(md))
    w2_p = jnp.zeros((dout_p, dout_p), md).at[:Dout, :Dout].set(w2.astype(md))
    b1_p = jnp.zeros((1, dout_p), f32).at[:, :Dout].set(b1.astype(f32))
    b2_p = jnp.zeros((1, dout_p), f32).at[:, :Dout].set(b2.astype(f32))
    gamma_p = jnp.ones((1, dout_p), f32).at[:, :Dout].set(gamma.astype(f32))
    beta_p = jnp.zeros((1, dout_p), f32).at[:, :Dout].set(beta.astype(f32))

    def resident(shape):
        return pl.BlockSpec(shape, lambda *_: (0,) * len(shape))

    # ---- VMEM sizing for the fused path ----
    isz = md.itemsize
    vmem_need = (
        2 * (Din * dout_p + dout_p * dout_p) * isz      # resident weights (x2 bufs)
        + 2 * 4 * dout_p * 4 * 2                        # bias / affine rows
        + 2 * tm * Din * x.dtype.itemsize               # double-buffered x tile
        + 2 * tm * dout_p * out_dt.itemsize             # double-buffered out tile
        + 2 * n_tiles * tm * dout_p * 4                 # h + x1 scratch (f32)
        + 8 * dout_p * 4                                # stats scratch
    )
    use_fused = (not force_two_pass) and (vmem_need <= fuse_vmem_budget)

    if use_fused:
        out_p = pl.pallas_call(
            functools.partial(_fused_kernel, batch=B, tm=tm, matmul_dtype=md),
            out_shape=jax.ShapeDtypeStruct((B, dout_p), out_dt),
            grid=(2, n_tiles),
            in_specs=[
                # x only needed in phase 0; phase 1 parks on block 0 (no re-DMA).
                pl.BlockSpec((tm, Din), lambda p, i: (i * (1 - p), 0)),
                resident((Din, dout_p)),     # W1 (matmul dtype, VMEM-resident)
                resident((1, dout_p)),       # b1
                resident((dout_p, dout_p)),  # W2
                resident((1, dout_p)),       # b2
                resident((1, dout_p)),       # gamma
                resident((1, dout_p)),       # beta
            ],
            # Output parks on block 0 during phase 0 -> no garbage write-back.
            out_specs=pl.BlockSpec((tm, dout_p), lambda p, i: (i * p, 0)),
            scratch_shapes=[
                pltpu.VMEM((n_tiles * tm, dout_p), jnp.float32),   # h
                pltpu.VMEM((n_tiles * tm, dout_p), jnp.float32),   # x1
                pltpu.VMEM((2, dout_p), jnp.float32),              # [sum; sumsq]
            ],
            compiler_params=pltpu.CompilerParams(
                dimension_semantics=("arbitrary", "arbitrary"),
                vmem_limit_bytes=_VMEM_LIMIT),
            cost_estimate=pl.CostEstimate(
                flops=2 * B * dout_p * (Din + dout_p) + 12 * B * dout_p,
                transcendentals=B * dout_p + B,
                bytes_accessed=4 * B * Din + isz * dout_p * (Din + dout_p)
                               + out_dt.itemsize * B * dout_p),
        )(x, w1_p, b1_p, w2_p, b2_p, gamma_p, beta_p)
        return out_p[:, :Dout]

    # -------------------- two-pass path (large batch) -------------------- #
    ncore = 2 if n_tiles >= 2 else 1           # shard stage-1 FLOPs across v7x TCs
    tiles_per_core = pl.cdiv(n_tiles, ncore)

    def tile_map(c, j):
        # Clamp the (possibly) overhanging last grid point of core 1 onto its own
        # last real tile; its stats contribution is masked out in-kernel.
        return (jnp.minimum(c * tiles_per_core + j, n_tiles - 1), 0)

    h_md, stats_part = pl.pallas_call(
        functools.partial(_stage1_kernel, batch=B, tm=tm,
                          tiles_per_core=tiles_per_core, matmul_dtype=md),
        out_shape=(
            jax.ShapeDtypeStruct((B, dout_p), md),            # h (matmul dtype)
            jax.ShapeDtypeStruct((8 * ncore, dout_p), f32),   # per-core [sum; sumsq]
        ),
        grid=(ncore, tiles_per_core),
        in_specs=[
            pl.BlockSpec((tm, Din), tile_map),
            resident((Din, dout_p)),
            resident((1, dout_p)),
            resident((dout_p, dout_p)),
            resident((1, dout_p)),
        ],
        out_specs=(
            pl.BlockSpec((tm, dout_p), tile_map),
            pl.BlockSpec((8, dout_p), lambda c, j: (c, 0)),   # partial stats / core
        ),
        compiler_params=pltpu.CompilerParams(
            dimension_semantics=("parallel", "arbitrary"),
            vmem_limit_bytes=_VMEM_LIMIT),
        cost_estimate=pl.CostEstimate(
            flops=2 * B * dout_p * (Din + dout_p),
            transcendentals=0,
            bytes_accessed=4 * B * Din
                           + isz * (dout_p * (Din + dout_p) + B * dout_p)),
    )(x, w1_p, b1_p, w2_p, b2_p)

    # Tiny reductions / BN folding on (1, dout_p) rows — done once in the wrapper.
    stats = stats_part.reshape(ncore, 8, dout_p)[:, :2, :].sum(axis=0)
    mean = stats[0:1] / B
    var = jnp.maximum(stats[1:2] / B - mean * mean, 0.0)
    scale = gamma_p * lax.rsqrt(var + _EPS_BN)
    shift = beta_p - mean * scale

    out_p = pl.pallas_call(
        _stage2_kernel,
        out_shape=jax.ShapeDtypeStruct((B, dout_p), out_dt),
        grid=(n_tiles,),
        in_specs=[
            pl.BlockSpec((tm, dout_p), lambda i: (i, 0)),   # h tile
            resident((dout_p, dout_p)),                     # W2 (recompute x1)
            resident((1, dout_p)),                          # b2
            resident((1, dout_p)),                          # scale
            resident((1, dout_p)),                          # shift
        ],
        out_specs=pl.BlockSpec((tm, dout_p), lambda i: (i, 0)),
        compiler_params=pltpu.CompilerParams(
            dimension_semantics=("parallel",),
            vmem_limit_bytes=_VMEM_LIMIT),
        cost_estimate=pl.CostEstimate(
            flops=2 * B * dout_p * dout_p + 12 * B * dout_p,
            transcendentals=B * dout_p + B,
            bytes_accessed=isz * (B + dout_p) * dout_p
                           + out_dt.itemsize * B * dout_p),
    )(h_md, w2_p, b2_p, scale, shift)
    return out_p[:, :Dout]


@functools.partial(jax.jit, static_argnames=(
    "block_rows", "matmul_dtype", "out_dtype", "fuse_vmem_budget",
    "force_two_pass"))
def gated_embedding_unit(x, w1, b1, w2, b2, gamma, beta, *,
                         block_rows=256,
                         matmul_dtype=jnp.bfloat16,
                         out_dtype=jnp.float32,
                         fuse_vmem_budget=24 * 1024 * 1024,
                         force_two_pass=False):
    """x: (B, Din); w1: (Din, Dout); w2: (Dout, Dout); b1/b2/gamma/beta: (1, Dout)."""
    return _geu_impl(x, w1, b1, w2, b2, gamma, beta,
                     block_rows=block_rows, matmul_dtype=matmul_dtype,
                     out_dtype=out_dtype, fuse_vmem_budget=fuse_vmem_budget,
                     force_two_pass=force_two_pass)


# --------------------------------------------------------------------------- #
# Pure-JAX reference (PyTorch training-mode semantics).
# --------------------------------------------------------------------------- #
def reference(x, w1, b1, w2, b2, gamma, beta):
    h = x @ w1 + b1
    x1 = h @ w2 + b2
    mean = jnp.mean(x1, axis=0, keepdims=True)
    var = jnp.mean((x1 - mean) ** 2, axis=0, keepdims=True)
    x1n = (x1 - mean) / jnp.sqrt(var + _EPS_BN) * gamma + beta
    g = h * jax.nn.sigmoid(x1n)
    nrm = jnp.linalg.norm(g, axis=-1, keepdims=True)
    return g / jnp.maximum(nrm, 1e-12)


if __name__ == "__main__":
    # Non-128-aligned / non-tile-aligned sizes so padding, partial blocks,
    # BN row-masking, the fused path and the two-pass (clamped odd-tile) path
    # are all exercised.
    B, Din, Dout = 200, 160, 96

    key = jax.random.PRNGKey(0)
    k_x, k_w1, k_b1, k_w2, k_b2 = jax.random.split(key, 5)

    x = jax.random.normal(k_x, (B, Din), dtype=jnp.float32)
    lim1 = 1.0 / (Din ** 0.5)
    w1 = jax.random.uniform(k_w1, (Din, Dout), jnp.float32, -lim1, lim1)
    b1 = jax.random.uniform(k_b1, (1, Dout), jnp.float32, -lim1, lim1)
    lim2 = 1.0 / (Dout ** 0.5)
    w2 = jax.random.uniform(k_w2, (Dout, Dout), jnp.float32, -lim2, lim2)
    b2 = jax.random.uniform(k_b2, (1, Dout), jnp.float32, -lim2, lim2)
    gamma = jnp.ones((1, Dout), jnp.float32)   # BatchNorm1d default affine init
    beta = jnp.zeros((1, Dout), jnp.float32)

    ref = reference(x, w1, b1, w2, b2, gamma, beta)

    # 1) Fused path, exact f32 matmuls: tight check.
    out = jax.block_until_ready(gated_embedding_unit(
        x, w1, b1, w2, b2, gamma, beta, matmul_dtype=jnp.float32))
    assert out.shape == (B, Dout)
    assert jnp.allclose(out, ref, atol=1e-4, rtol=1e-4), "fused f32 mismatch"

    # 2) Two-pass path (x1 recompute, 2-core stage 1, odd tile count), f32.
    out = jax.block_until_ready(gated_embedding_unit(
        x, w1, b1, w2, b2, gamma, beta, matmul_dtype=jnp.float32,
        force_two_pass=True, block_rows=48))
    assert out.shape == (B, Dout)
    assert jnp.allclose(out, ref, atol=1e-4, rtol=1e-4), "two-pass f32 mismatch"

    # 3) Default fast path (fused, bf16 MXU inputs, f32 accumulate + epilogue).
    out = jax.block_until_ready(gated_embedding_unit(x, w1, b1, w2, b2, gamma, beta))
    assert out.shape == (B, Dout)
    assert jnp.allclose(out, ref, atol=3e-2), "fused bf16 mismatch"

    # 4) Two-pass fast path (bf16 h intermediate + x1 recompute).
    out = jax.block_until_ready(gated_embedding_unit(
        x, w1, b1, w2, b2, gamma, beta, force_two_pass=True, block_rows=64))
    assert out.shape == (B, Dout)
    assert jnp.allclose(out, ref, atol=3e-2), "two-pass bf16 mismatch"

    print("KERNEL_OK")
</pallas_src>

<mosaic_0001>
module attributes {stable_mosaic.version = 11 : i64} {
  func.func @_fused_kernel(%arg0: i32, %arg1: i32, %arg2: memref<208x160xf32, #tpu.memory_space<vmem>>, %arg3: memref<160x128xf32, #tpu.memory_space<vmem>>, %arg4: memref<1x128xf32, #tpu.memory_space<vmem>>, %arg5: memref<128x128xf32, #tpu.memory_space<vmem>>, %arg6: memref<1x128xf32, #tpu.memory_space<vmem>>, %arg7: memref<1x128xf32, #tpu.memory_space<vmem>>, %arg8: memref<1x128xf32, #tpu.memory_space<vmem>>, %arg9: memref<208x128xf32, #tpu.memory_space<vmem>>, %arg10: memref<208x128xf32, #tpu.memory_space<vmem>>, %arg11: memref<208x128xf32, #tpu.memory_space<vmem>>, %arg12: memref<2x128xf32, #tpu.memory_space<vmem>>) attributes {dimension_semantics = [#tpu.dimension_semantics<arbitrary>, #tpu.dimension_semantics<arbitrary>], iteration_bounds = array<i64: 2, 1>, scalar_prefetch = 0 : i64, scratch_operands = 3 : i64, tpu.core_type = #tpu.core_type<tc>, window_params = [{transform_indices = @transform_0, window_bounds = array<i64: 208, 160>}, {pipeline_mode = #tpu.pipeline_mode<synchronous>, transform_indices = @transform_1, window_bounds = array<i64: 160, 128>}, {pipeline_mode = #tpu.pipeline_mode<synchronous>, transform_indices = @transform_2, window_bounds = array<i64: 1, 128>}, {pipeline_mode = #tpu.pipeline_mode<synchronous>, transform_indices = @transform_3, window_bounds = array<i64: 128, 128>}, {pipeline_mode = #tpu.pipeline_mode<synchronous>, transform_indices = @transform_4, window_bounds = array<i64: 1, 128>}, {pipeline_mode = #tpu.pipeline_mode<synchronous>, transform_indices = @transform_5, window_bounds = array<i64: 1, 128>}, {pipeline_mode = #tpu.pipeline_mode<synchronous>, transform_indices = @transform_6, window_bounds = array<i64: 1, 128>}, {transform_indices = @transform_7, window_bounds = array<i64: 208, 128>}]} {
    %c208_i32 = arith.constant 208 : i32
    %0 = arith.muli %arg1, %c208_i32 : i32
    %1 = tpu.assume_multiple %0, 8 : i32
    %c0_i32 = arith.constant 0 : i32
    %2 = arith.cmpi eq, %arg0, %c0_i32 : i32
    %c0_i32_0 = arith.constant 0 : i32
    %3 = arith.cmpi eq, %arg1, %c0_i32_0 : i32
    %4 = arith.andi %2, %3 : i1
    %5 = arith.extui %4 : i1 to i32
    %c0_i32_1 = arith.constant 0 : i32
    %6 = arith.cmpi ne, %5, %c0_i32_1 : i32
    scf.if %6 {
      %cst = arith.constant 0.000000e+00 : f32
      %13 = vector.broadcast %cst : f32 to vector<2x128xf32>
      %c0 = arith.constant 0 : index
      %c0_5 = arith.constant 0 : index
      %14 = vector.load %arg12[%c0, %c0_5] : memref<2x128xf32, #tpu.memory_space<vmem>>, vector<2x128xf32>
      tpu.vector_store %arg12[%c0, %c0_5], %13 {strides = array<i32>} : memref<2x128xf32, #tpu.memory_space<vmem>>, vector<2x128xf32>,
    } else {
    }
    %c0_i32_2 = arith.constant 0 : i32
    %7 = arith.cmpi eq, %arg0, %c0_i32_2 : i32
    %8 = arith.extui %7 : i1 to i32
    %c0_i32_3 = arith.constant 0 : i32
    %9 = arith.cmpi ne, %8, %c0_i32_3 : i32
    scf.if %9 {
      %c0 = arith.constant 0 : index
      %c0_5 = arith.constant 0 : index
      %13 = vector.load %arg2[%c0, %c0_5] : memref<208x160xf32, #tpu.memory_space<vmem>>, vector<208x160xf32>
      %c0_6 = arith.constant 0 : index
      %c0_7 = arith.constant 0 : index
      %14 = vector.load %arg3[%c0_6, %c0_7] : memref<160x128xf32, #tpu.memory_space<vmem>>, vector<160x128xf32>
      %cst = arith.constant dense<0.000000e+00> : vector<208x128xf32>
      %15 = tpu.matmul %13, %14, %cst {dimension_numbers = #tpu.dot_dimension_numbers<[1], [0], [0], [1], [0, 0, 1, 1], [], []>} : vector<208x160xf32>, vector<160x128xf32>, vector<208x128xf32> -> vector<208x128xf32>
      %c0_8 = arith.constant 0 : index
      %c0_9 = arith.constant 0 : index
      %16 = vector.load %arg4[%c0_8, %c0_9] : memref<1x128xf32, #tpu.memory_space<vmem>>, vector<1x128xf32>
      %17 = vector.broadcast %16 : vector<1x128xf32> to vector<208x128xf32>
      %18 = arith.addf %15, %17 : vector<208x128xf32>
      %c0_10 = arith.constant 0 : index
      %c0_11 = arith.constant 0 : index
      %19 = vector.load %arg5[%c0_10, %c0_11] : memref<128x128xf32, #tpu.memory_space<vmem>>, vector<128x128xf32>
      %cst_12 = arith.constant dense<0.000000e+00> : vector<208x128xf32>
      %20 = tpu.matmul %18, %19, %cst_12 {dimension_numbers = #tpu.dot_dimension_numbers<[1], [0], [0], [1], [0, 0, 1, 1], [], []>} : vector<208x128xf32>, vector<128x128xf32>, vector<208x128xf32> -> vector<208x128xf32>
      %c0_13 = arith.constant 0 : index
      %c0_14 = arith.constant 0 : index
      %21 = vector.load %arg6[%c0_13, %c0_14] : memref<1x128xf32, #tpu.memory_space<vmem>>, vector<1x128xf32>
      %22 = vector.broadcast %21 : vector<1x128xf32> to vector<208x128xf32>
      %23 = arith.addf %20, %22 : vector<208x128xf32>
      %24 = arith.index_cast %1 : i32 to index
      %c0_15 = arith.constant 0 : index
      %25 = vector.load %arg10[%24, %c0_15] : memref<208x128xf32, #tpu.memory_space<vmem>>, vector<208x128xf32>
      tpu.vector_store %arg10[%24, %c0_15], %18 {strides = array<i32>} : memref<208x128xf32, #tpu.memory_space<vmem>>, vector<208x128xf32>,
      %26 = arith.index_cast %1 : i32 to index
      %c0_16 = arith.constant 0 : index
      %27 = vector.load %arg11[%26, %c0_16] : memref<208x128xf32, #tpu.memory_space<vmem>>, vector<208x128xf32>
      tpu.vector_store %arg11[%26, %c0_16], %23 {strides = array<i32>} : memref<208x128xf32, #tpu.memory_space<vmem>>, vector<208x128xf32>,
      %c208_i32_17 = arith.constant 208 : i32
      %28 = arith.muli %arg1, %c208_i32_17 : i32
      %29 = tpu.iota {dimensions = array<i32: 0>} : vector<208x1xi32>
      %30 = vector.broadcast %28 : i32 to vector<208x1xi32>
      %31 = arith.addi %30, %29 : vector<208x1xi32>
      %c200_i32 = arith.constant 200 : i32
      %32 = vector.broadcast %c200_i32 : i32 to vector<208x1xi32>
      %33 = arith.cmpi slt, %31, %32 : vector<208x1xi32>
      %cst_18 = arith.constant 0.000000e+00 : f32
      %34 = vector.shape_cast %33 : vector<208x1xi1> to vector<208x1xi1>
      %35 = vector.broadcast %34 : vector<208x1xi1> to vector<208x128xi1>
      %36 = vector.broadcast %cst_18 : f32 to vector<208x128xf32>
      %37 = arith.select %35, %23, %36 : vector<208x128xi1>, vector<208x128xf32>
      %c0_19 = arith.constant 0 : index
      %c0_20 = arith.constant 0 : index
      %38 = vector.load %arg12[%c0_19, %c0_20] : memref<2x128xf32, #tpu.memory_space<vmem>>, vector<1x128xf32>
      %cst_21 = arith.constant dense<0.000000e+00> : vector<128xf32>
      %39 = vector.multi_reduction <add>, %37, %cst_21 [0] : vector<208x128xf32> to vector<128xf32>
      %40 = vector.shape_cast %39 : vector<128xf32> to vector<1x128xf32>
      %41 = arith.addf %38, %40 : vector<1x128xf32>
      %c0_22 = arith.constant 0 : index
      %c0_23 = arith.constant 0 : index
      %42 = vector.load %arg12[%c0_22, %c0_23] : memref<2x128xf32, #tpu.memory_space<vmem>>, vector<1x128xf32>
      tpu.vector_store %arg12[%c0_22, %c0_23], %41 {strides = array<i32>} : memref<2x128xf32, #tpu.memory_space<vmem>>, vector<1x128xf32>,
      %c1 = arith.constant 1 : index
      %c0_24 = arith.constant 0 : index
      %43 = vector.load %arg12[%c1, %c0_24] : memref<2x128xf32, #tpu.memory_space<vmem>>, vector<1x128xf32>
      %44 = arith.mulf %37, %37 : vector<208x128xf32>
      %cst_25 = arith.constant dense<0.000000e+00> : vector<128xf32>
      %45 = vector.multi_reduction <add>, %44, %cst_25 [0] : vector<208x128xf32> to vector<128xf32>
      %46 = vector.shape_cast %45 : vector<128xf32> to vector<1x128xf32>
      %47 = arith.addf %43, %46 : vector<1x128xf32>
      %c1_26 = arith.constant 1 : index
      %c0_27 = arith.constant 0 : index
      %48 = vector.load %arg12[%c1_26, %c0_27] : memref<2x128xf32, #tpu.memory_space<vmem>>, vector<1x128xf32>
      tpu.vector_store %arg12[%c1_26, %c0_27], %47 {strides = array<i32>} : memref<2x128xf32, #tpu.memory_space<vmem>>, vector<1x128xf32>,
    } else {
    }
    %c1_i32 = arith.constant 1 : i32
    %10 = arith.cmpi eq, %arg0, %c1_i32 : i32
    %11 = arith.extui %10 : i1 to i32
    %c0_i32_4 = arith.constant 0 : i32
    %12 = arith.cmpi ne, %11, %c0_i32_4 : i32
    scf.if %12 {
      %13 = arith.index_cast %1 : i32 to index
      %c0 = arith.constant 0 : index
      %14 = vector.load %arg10[%13, %c0] : memref<208x128xf32, #tpu.memory_space<vmem>>, vector<208x128xf32>
      %15 = arith.index_cast %1 : i32 to index
      %c0_5 = arith.constant 0 : index
      %16 = vector.load %arg11[%15, %c0_5] : memref<208x128xf32, #tpu.memory_space<vmem>>, vector<208x128xf32>
      %c0_6 = arith.constant 0 : index
      %c0_7 = arith.constant 0 : index
      %17 = vector.load %arg12[%c0_6, %c0_7] : memref<2x128xf32, #tpu.memory_space<vmem>>, vector<1x128xf32>
      %cst = arith.constant 5.000000e-03 : f32
      %18 = vector.broadcast %cst : f32 to vector<1x128xf32>
      %19 = arith.mulf %17, %18 : vector<1x128xf32>
      %c1 = arith.constant 1 : index
      %c0_8 = arith.constant 0 : index
      %20 = vector.load %arg12[%c1, %c0_8] : memref<2x128xf32, #tpu.memory_space<vmem>>, vector<1x128xf32>
      %cst_9 = arith.constant 5.000000e-03 : f32
      %21 = vector.broadcast %cst_9 : f32 to vector<1x128xf32>
      %22 = arith.mulf %20, %21 : vector<1x128xf32>
      %23 = arith.mulf %19, %19 : vector<1x128xf32>
      %24 = arith.subf %22, %23 : vector<1x128xf32>
      %cst_10 = arith.constant 0.000000e+00 : f32
      %25 = vector.broadcast %cst_10 : f32 to vector<1x128xf32>
      %26 = arith.maximumf %24, %25 : vector<1x128xf32>
      %c0_11 = arith.constant 0 : index
      %c0_12 = arith.constant 0 : index
      %27 = vector.load %arg7[%c0_11, %c0_12] : memref<1x128xf32, #tpu.memory_space<vmem>>, vector<1x128xf32>
      %cst_13 = arith.constant 9.99999974E-6 : f32
      %28 = vector.broadcast %cst_13 : f32 to vector<1x128xf32>
      %29 = arith.addf %26, %28 : vector<1x128xf32>
      %30 = math.rsqrt %29 : vector<1x128xf32>
      %31 = arith.mulf %27, %30 : vector<1x128xf32>
      %c0_14 = arith.constant 0 : index
      %c0_15 = arith.constant 0 : index
      %32 = vector.load %arg8[%c0_14, %c0_15] : memref<1x128xf32, #tpu.memory_space<vmem>>, vector<1x128xf32>
      %33 = arith.mulf %19, %31 : vector<1x128xf32>
      %34 = arith.subf %32, %33 : vector<1x128xf32>
      %35 = vector.broadcast %31 : vector<1x128xf32> to vector<208x128xf32>
      %36 = arith.mulf %16, %35 : vector<208x128xf32>
      %37 = vector.broadcast %34 : vector<1x128xf32> to vector<208x128xf32>
      %38 = arith.addf %36, %37 : vector<208x128xf32>
      %39 = arith.negf %38 : vector<208x128xf32>
      %40 = math.exp %39 : vector<208x128xf32>
      %cst_16 = arith.constant 1.000000e+00 : f32
      %41 = vector.broadcast %cst_16 : f32 to vector<208x128xf32>
      %42 = arith.addf %41, %40 : vector<208x128xf32>
      %43 = arith.divf %41, %42 : vector<208x128xf32>
      %44 = arith.mulf %14, %43 : vector<208x128xf32>
      %45 = arith.mulf %44, %44 : vector<208x128xf32>
      %cst_17 = arith.constant dense<0.000000e+00> : vector<208xf32>
      %46 = vector.multi_reduction <add>, %45, %cst_17 [1] : vector<208x128xf32> to vector<208xf32>
      %47 = vector.shape_cast %46 : vector<208xf32> to vector<208x1xf32>
      %cst_18 = arith.constant 1.000000e-24 : f32
      %48 = vector.broadcast %cst_18 : f32 to vector<208x1xf32>
      %49 = arith.maximumf %47, %48 : vector<208x1xf32>
      %50 = math.rsqrt %49 : vector<208x1xf32>
      %51 = vector.broadcast %50 : vector<208x1xf32> to vector<208x128xf32>
      %52 = arith.mulf %44, %51 : vector<208x128xf32>
      %c0_19 = arith.constant 0 : index
      %c0_20 = arith.constant 0 : index
      %53 = vector.load %arg9[%c0_19, %c0_20] : memref<208x128xf32, #tpu.memory_space<vmem>>, vector<208x128xf32>
      tpu.vector_store %arg9[%c0_19, %c0_20], %52 {strides = array<i32>} : memref<208x128xf32, #tpu.memory_space<vmem>>, vector<208x128xf32>,
    } else {
    }
    return
  }
  func.func @transform_0(%arg0: i32, %arg1: i32) -> (i32, i32) {
    %c1_i32 = arith.constant 1 : i32
    %0 = arith.subi %c1_i32, %arg0 : i32
    %1 = arith.muli %arg1, %0 : i32
    %c0_i32 = arith.constant 0 : i32
    %c0_i32_0 = arith.constant 0 : i32
    return %1, %c0_i32 : i32, i32
  }
  func.func @transform_1(%arg0: i32, %arg1: i32) -> (i32, i32) {
    %c0_i32 = arith.constant 0 : i32
    %c0_i32_0 = arith.constant 0 : i32
    %c0_i32_1 = arith.constant 0 : i32
    return %c0_i32, %c0_i32_0 : i32, i32
  }
  func.func @transform_2(%arg0: i32, %arg1: i32) -> (i32, i32) {
    %c0_i32 = arith.constant 0 : i32
    %c0_i32_0 = arith.constant 0 : i32
    %c0_i32_1 = arith.constant 0 : i32
    return %c0_i32, %c0_i32_0 : i32, i32
  }
  func.func @transform_3(%arg0: i32, %arg1: i32) -> (i32, i32) {
    %c0_i32 = arith.constant 0 : i32
    %c0_i32_0 = arith.constant 0 : i32
    %c0_i32_1 = arith.constant 0 : i32
    return %c0_i32, %c0_i32_0 : i32, i32
  }
  func.func @transform_4(%arg0: i32, %arg1: i32) -> (i32, i32) {
    %c0_i32 = arith.constant 0 : i32
    %c0_i32_0 = arith.constant 0 : i32
    %c0_i32_1 = arith.constant 0 : i32
    return %c0_i32, %c0_i32_0 : i32, i32
  }
  func.func @transform_5(%arg0: i32, %arg1: i32) -> (i32, i32) {
    %c0_i32 = arith.constant 0 : i32
    %c0_i32_0 = arith.constant 0 : i32
    %c0_i32_1 = arith.constant 0 : i32
    return %c0_i32, %c0_i32_0 : i32, i32
  }
  func.func @transform_6(%arg0: i32, %arg1: i32) -> (i32, i32) {
    %c0_i32 = arith.constant 0 : i32
    %c0_i32_0 = arith.constant 0 : i32
    %c0_i32_1 = arith.constant 0 : i32
    return %c0_i32, %c0_i32_0 : i32, i32
  }
  func.func @transform_7(%arg0: i32, %arg1: i32) -> (i32, i32) {
    %0 = arith.muli %arg1, %arg0 : i32
    %c0_i32 = arith.constant 0 : i32
    %c0_i32_0 = arith.constant 0 : i32
    return %0, %c0_i32 : i32, i32
  }
}

</mosaic_0001>

<bundles_post_ra>
// kernel: gated_embedding_unit.1
= control target key start
LH: loop header
LB: loop body
LE: loop exit
PB: predicated region body
PF: predicated region fallthrough
CT: control target
= control target key end

     0   :  { %s2590_s24 = smov 0   ;;  %s2592_s25 = smov 0   ;;  %s3257_s0 = inlined_call_operand.vmem [shape: f32[200,160], index: 0, kind: input, shape index: {}]   ;;  %s3258_s1 = inlined_call_operand.vmem [shape: f32[160,128], index: 1, kind: input, shape index: {}]   ;;  %s3259_s2 = inlined_call_operand.vmem [shape: f32[1,128], index: 2, kind: input, shape index: {}]   ;;  %s3260_s3 = inlined_call_operand.vmem [shape: f32[128,128], index: 3, kind: input, shape index: {}]   ;;  %s3261_s4 = inlined_call_operand.vmem [shape: f32[1,128], index: 4, kind: input, shape index: {}]   ;;  %s3262_s5 = inlined_call_operand.vmem [shape: f32[1,128], index: 5, kind: input, shape index: {}]   ;;  %s3263_s6 = inlined_call_operand.vmem [shape: f32[1,128], index: 6, kind: input, shape index: {}]   ;;  %s3264_s7 = inlined_call_operand.vmem [shape: f32[200,128], index: 7, kind: output, shape index: {}]  }
   0x1   :  { %s2594_s26 = smov 0  }
   0x2 LB: > { %s2041_s27 = sadd.s32 4294967295, %s2542_s26   ;;  %s29_s28 = sadd.s32 1, %s2538_s25  ;;  %s2542_s26 = sphi %s2594_s26, %s17_s26   ;;  %s2538_s25 = sphi %s2592_s25, %s3266_s25   ;;  %s2534_s24 = sphi %s2590_s24, %s3265_s24  }
   0x3   : > { %p31_p0 = scmp.ge.s32.totalorder %s29_s28, 2  ;;  %p2046_p1 = scmp.ge.s32.totalorder %s2542_s26, 1 }
   0x4   : > { %p267_p2 = scmp.lt.s32.totalorder %s2542_s26, 3 }
   0x5   : > { %s3268_s28 = smov (%p31_p0, %s29_s28), 0 }
   0x6   : > { %p268_p3 = pnand %p2046_p1, %p267_p2 }
   0x7   : > { %p326_p4 = scmp.eq.s32.totalorder (!%p268_p3), %s2534_s24, 0 }
   0x8   : > { %271 = sbr.rel (%p268_p3) target bundleno = 910 (0x38e), region = 48 }
   0xf   : > { %331 = sbr.rel (!%p326_p4) target bundleno = 22 (0x16), region = 52  ;;  %v2548_v0 = vmov (%p326_p4), 0.0  }
  0x10   : > { %332 = vst [vmem:[#allocation4] sm:$0x3] (%p326_p4), %v2548_v0 }
  0x16 PF: > { %p2048_p5 = scmp.ne.s32.totalorder %s2534_s24, 0 }
  0x17   : > { %v388_v1 = vld [vmem:[%s3258_s1] sm:$0xff] (!%p2048_p5)  ;;  %v389_v2 = vld [vmem:[%s3258_s1 + $0x8] sm:$0xff] (!%p2048_p5)  ;;  %v390_v3 = vld [vmem:[%s3258_s1 + $0x10] sm:$0xff] (!%p2048_p5)  ;;  %v2549_v4 = vmov (!%p2048_p5), 0.0|0.0   ;;  %vm415_vm0 = vcmask (!%p2048_p5), 261120  }
  0x18   : > { %335 = sbr.rel (%p2048_p5) target bundleno = 613 (0x265), region = 56  ;;  %2226 = vmatprep.subr.bf16.mxu0 (!%p2048_p5), %v2549_v4  ;;  %v2227_v5 = vpack.c.bf16 (!%p2048_p5), %v389_v2, %v388_v1  ;;  %v391_v6 = vld [vmem:[%s3258_s1 + $0x18] sm:$0xff] (!%p2048_p5)  ;;  %v392_v8 = vld [vmem:[%s3258_s1 + $0x20] sm:$0xff] (!%p2048_p5)  ;;  %v393_v9 = vld [vmem:[%s3258_s1 + $0x28] sm:$0xff] (!%p2048_p5) }
  0x19   : > { %v2230_v7 = vpack.c.bf16 (!%p2048_p5), %v391_v6, %v390_v3  ;;  %v337_v10 = vld [vmem:[%s3257_s0 + $0x8] sm:$0xff] (!%p2048_p5)  ;;  %v2233_v11 = vpack.c.bf16 (!%p2048_p5), %v393_v9, %v392_v8  ;;  %v394_v12 = vld [vmem:[%s3258_s1 + $0x30] sm:$0xff] (!%p2048_p5)  ;;  %v395_v13 = vld [vmem:[%s3258_s1 + $0x38] sm:$0xff] (!%p2048_p5) }
  0x1a   : > { %2228 = vmatpush1.bf16.msra.mxu0 (!%p2048_p5), %v2227_v5  ;;  %2050 = vmatprep.mubr.msk.f32.mxu0 (!%p2048_p5), %vm415_vm0, %v337_v10  ;;  %v2236_v14 = vpack.c.bf16 (!%p2048_p5), %v395_v13, %v394_v12  ;;  %v396_v15 = vld [vmem:[%s3258_s1 + $0x40] sm:$0xff] (!%p2048_p5)  ;;  %v397_v16 = vld [vmem:[%s3258_s1 + $0x48] sm:$0xff] (!%p2048_p5)  ;;  %v398_v18 = vld [vmem:[%s3258_s1 + $0x50] sm:$0xff] (!%p2048_p5) }
  0x1b   : > { %2229 = vmatprep.subr.bf16.mxu0 (!%p2048_p5), %v2549_v4  ;;  %v2239_v17 = vpack.c.bf16 (!%p2048_p5), %v397_v16, %v396_v15  ;;  %v399_v19 = vld [vmem:[%s3258_s1 + $0x58] sm:$0xff] (!%p2048_p5)  ;;  %v400_v21 = vld [vmem:[%s3258_s1 + $0x60] sm:$0xff] (!%p2048_p5)  ;;  %v401_v22 = vld [vmem:[%s3258_s1 + $0x68] sm:$0xff] (!%p2048_p5) }
  0x1c   : > { %v2242_v20 = vpack.c.bf16 (!%p2048_p5), %v399_v19, %v398_v18  ;;  %v2245_v23 = vpack.c.bf16 (!%p2048_p5), %v401_v22, %v400_v21  ;;  %v402_v24 = vld [vmem:[%s3258_s1 + $0x70] sm:$0xff] (!%p2048_p5)  ;;  %v403_v25 = vld [vmem:[%s3258_s1 + $0x78] sm:$0xff] (!%p2048_p5)  ;;  %v689_v26 = vld [vmem:[%s3260_s3] sm:$0xff] (!%p2048_p5) }
  0x1d   : > { %v690_v27 = vld [vmem:[%s3260_s3 + $0x8] sm:$0xff] (!%p2048_p5)  ;;  %v691_v28 = vld [vmem:[%s3260_s3 + $0x10] sm:$0xff] (!%p2048_p5)  ;;  %v692_v30 = vld [vmem:[%s3260_s3 + $0x18] sm:$0xff] (!%p2048_p5)  ;;  %v2248_v34 = vpack.c.bf16 (!%p2048_p5), %v403_v25, %v402_v24 }
  0x1e   : > { %2231 = vmatpush1.bf16.msra.mxu0 (!%p2048_p5), %v2230_v7  ;;  %v2256_v29 = vpack.c.bf16 (!%p2048_p5), %v690_v27, %v689_v26  ;;  %v2260_v31 = vpack.c.bf16 (!%p2048_p5), %v692_v30, %v691_v28  ;;  %v693_v32 = vld [vmem:[%s3260_s3 + $0x20] sm:$0xff] (!%p2048_p5)  ;;  %v694_v33 = vld [vmem:[%s3260_s3 + $0x28] sm:$0xff] (!%p2048_p5)  ;;  %v695_v38 = vld [vmem:[%s3260_s3 + $0x30] sm:$0xff] (!%p2048_p5) }
  0x1f   : > { %2232 = vmatprep.subr.bf16.mxu0 %v2549_v4  ;;  %v404_v35 = vld [vmem:[%s3258_s1 + $0x80] sm:$0xff]  ;;  %v405_v36 = vld [vmem:[%s3258_s1 + $0x88] sm:$0xff]  ;;  %v2264_v37 = vpack.c.bf16 %v694_v33, %v693_v32  ;;  %v696_v39 = vld [vmem:[%s3260_s3 + $0x38] sm:$0xff] }
  0x20   : > { %2257 = vmatprep.subr.bf16.mxu1 %v2256_v29  ;;  %v2251_v40 = vpack.c.bf16 %v405_v36, %v404_v35  ;;  %v406_v41 = vld [vmem:[%s3258_s1 + $0x90] sm:$0xff]  ;;  %v407_v42 = vld [vmem:[%s3258_s1 + $0x98] sm:$0xff]  ;;  %v2268_v43 = vpack.c.bf16 %v696_v39, %v695_v38  ;;  %v697_v44 = vld [vmem:[%s3260_s3 + $0x40] sm:$0xff] }
  0x21   : > { %2259 = vmatpush3.bf16.msra.mxu1 %v2256_v29  ;;  %v698_v45 = vld [vmem:[%s3260_s3 + $0x48] sm:$0xff]  ;;  %v2254_v46 = vpack.c.bf16 %v407_v42, %v406_v41  ;;  %v699_v48 = vld [vmem:[%s3260_s3 + $0x50] sm:$0xff]  ;;  %v700_v49 = vld [vmem:[%s3260_s3 + $0x58] sm:$0xff] }
  0x22   : > { %2234 = vmatpush1.bf16.msra.mxu0 %v2233_v11  ;;  %2261 = vmatprep.subr.bf16.mxu1 %v2260_v31  ;;  %v2272_v47 = vpack.c.bf16 %v698_v45, %v697_v44  ;;  %v336_v50 = vld [vmem:[%s3257_s0] sm:$0xff]  ;;  %v339_v51 = vld [vmem:[%s3257_s0 + $0x18] sm:$0xff]  ;;  %v2276_v52 = vpack.c.bf16 %v700_v49, %v699_v48  ;;  %v702_v54 = vld [vmem:[%s3260_s3 + $0x68] sm:$0xff] }
  0x23   : > { %2235 = vmatprep.subr.bf16.mxu0 %v2549_v4  ;;  %v701_v53 = vld [vmem:[%s3260_s3 + $0x60] sm:$0xff]  ;;  %v338_v55 = vld [vmem:[%s3257_s0 + $0x10] sm:$0xff]  ;;  %v341_v56 = vld [vmem:[%s3257_s0 + $0x28] sm:$0xff] }
  0x24   : > { %v2280_v57 = vpack.c.bf16 %v702_v54, %v701_v53  ;;  %v340_v58 = vld [vmem:[%s3257_s0 + $0x20] sm:$0xff]  ;;  %v343_v59 = vld [vmem:[%s3257_s0 + $0x38] sm:$0xff]  ;;  %v342_v60 = vld [vmem:[%s3257_s0 + $0x30] sm:$0xff] }
  0x25   : > { %2263 = vmatpush3.bf16.msra.mxu1 %v2260_v31  ;;  %v345_v61 = vld [vmem:[%s3257_s0 + $0x48] sm:$0xff]  ;;  %v344_v62 = vld [vmem:[%s3257_s0 + $0x40] sm:$0xff]  ;;  %v347_v63 = vld [vmem:[%s3257_s0 + $0x58] sm:$0xff] }
  0x26   : > { %2237 = vmatpush1.bf16.msra.mxu0 %v2236_v14  ;;  %2265 = vmatprep.subr.bf16.mxu1 %v2264_v37  ;;  %v346_v0 = vld [vmem:[%s3257_s0 + $0x50] sm:$0xff]  ;;  %v349_v1 = vld [vmem:[%s3257_s0 + $0x68] sm:$0xff]  ;;  %v348_v2 = vld [vmem:[%s3257_s0 + $0x60] sm:$0xff] }
  0x27   : > { %2238 = vmatprep.subr.bf16.mxu0 %v2549_v4  ;;  %v351_v3 = vld [vmem:[%s3257_s0 + $0x78] sm:$0xff]  ;;  %v353_v5 = vld [vmem:[%s3257_s0 + $0x88] sm:$0xff]  ;;  %v352_v6 = vld [vmem:[%s3257_s0 + $0x80] sm:$0xff] }
  0x28   : > { %v355_v7 = vld [vmem:[%s3257_s0 + $0x98] sm:$0xff]  ;;  %v354_v8 = vld [vmem:[%s3257_s0 + $0x90] sm:$0xff]  ;;  %v357_v9 = vld [vmem:[%s3257_s0 + $0xa8] sm:$0xff] }
  0x29   : > { %2267 = vmatpush3.bf16.msra.mxu1 %v2264_v37  ;;  %v356_v10 = vld [vmem:[%s3257_s0 + $0xa0] sm:$0xff]  ;;  %v359_v11 = vld [vmem:[%s3257_s0 + $0xb8] sm:$0xff]  ;;  %v358_v12 = vld [vmem:[%s3257_s0 + $0xb0] sm:$0xff] }
  0x2a   : > { %2240 = vmatpush1.bf16.msra.mxu0 %v2239_v17  ;;  %2269 = vmatprep.subr.bf16.mxu1 %v2268_v43  ;;  %v361_v13 = vld [vmem:[%s3257_s0 + $0xc8] sm:$0xff]  ;;  %v360_v14 = vld [vmem:[%s3257_s0 + $0xc0] sm:$0xff]  ;;  %v363_v15 = vld [vmem:[%s3257_s0 + $0xd8] sm:$0xff] }
  0x2b   : > { %2241 = vmatprep.subr.bf16.mxu0 %v2549_v4  ;;  %v362_v16 = vld [vmem:[%s3257_s0 + $0xd0] sm:$0xff]  ;;  %v365_v17 = vld [vmem:[%s3257_s0 + $0xe8] sm:$0xff]  ;;  %v364_v18 = vld [vmem:[%s3257_s0 + $0xe0] sm:$0xff] }
  0x2c   : > { %v367_v19 = vld [vmem:[%s3257_s0 + $0xf8] sm:$0xff]  ;;  %v369_v21 = vld [vmem:[%s3257_s0 + $0x108] sm:$0xff]  ;;  %v368_v22 = vld [vmem:[%s3257_s0 + $0x100] sm:$0xff] }
  0x2d   : > { %2271 = vmatpush3.bf16.msra.mxu1 %v2268_v43  ;;  %v370_v24 = vld [vmem:[%s3257_s0 + $0x110] sm:$0xff]  ;;  %v373_v25 = vld [vmem:[%s3257_s0 + $0x128] sm:$0xff]  ;;  %v372_v26 = vld [vmem:[%s3257_s0 + $0x120] sm:$0xff] }
  0x2e   : > { %2243 = vmatpush1.bf16.msra.mxu0 %v2242_v20  ;;  %2273 = vmatprep.subr.bf16.mxu1 %v2272_v47  ;;  %v366_v20 = vld [vmem:[%s3257_s0 + $0xf0] sm:$0xff]  ;;  %v375_v27 = vld [vmem:[%s3257_s0 + $0x138] sm:$0xff]  ;;  %v377_v29 = vld [vmem:[%s3257_s0 + $0x148] sm:$0xff] }
  0x2f   : > { %2244 = vmatprep.subr.bf16.mxu0 %v2549_v4  ;;  %v374_v28 = vld [vmem:[%s3257_s0 + $0x130] sm:$0xff]  ;;  %v376_v30 = vld [vmem:[%s3257_s0 + $0x140] sm:$0xff]  ;;  %v379_v31 = vld [vmem:[%s3257_s0 + $0x158] sm:$0xff] }
  0x30   : > { %v378_v32 = vld [vmem:[%s3257_s0 + $0x150] sm:$0xff]  ;;  %v381_v33 = vld [vmem:[%s3257_s0 + $0x168] sm:$0xff]  ;;  %v704_v35 = vld [vmem:[%s3260_s3 + $0x78] sm:$0xff] }
  0x31   : > { %2275 = vmatpush3.bf16.msra.mxu1 %v2272_v47  ;;  %v380_v37 = vld [vmem:[%s3257_s0 + $0x160] sm:$0xff]  ;;  %v383_v38 = vld [vmem:[%s3257_s0 + $0x178] sm:$0xff]  ;;  %v382_v39 = vld [vmem:[%s3257_s0 + $0x170] sm:$0xff] }
  0x32   : > { %2246 = vmatpush1.bf16.msra.mxu0 %v2245_v23  ;;  %2277 = vmatprep.subr.bf16.mxu1 %v2276_v52  ;;  %v371_v23 = vld [vmem:[%s3257_s0 + $0x118] sm:$0xff]  ;;  %v384_v41 = vld [vmem:[%s3257_s0 + $0x180] sm:$0xff]  ;;  %v386_v43 = vld [vmem:[%s3257_s0 + $0x190] sm:$0xff] }
  0x33   : > { %2247 = vmatprep.subr.bf16.mxu0 %v2549_v4  ;;  %v387_v42 = vld [vmem:[%s3257_s0 + $0x198] sm:$0xff]  ;;  %v2916_v44 = vld [vmem:[%s3259_s2] ss:$0 sm:$0xff] }
  0x35   : > { %2279 = vmatpush3.bf16.msra.mxu1 %v2276_v52 }
  0x36   : > { %2249 = vmatpush1.bf16.msra.mxu0 %v2248_v34  ;;  %2281 = vmatprep.subr.bf16.mxu1 %v2280_v57  ;;  %v703_v34 = vld [vmem:[%s3260_s3 + $0x70] sm:$0xff] }
  0x37   : > { %2250 = vmatprep.subr.bf16.mxu0 %v2549_v4  ;;  %v2284_v36 = vpack.c.bf16 %v704_v35, %v703_v34 }
  0x39   : > { %2283 = vmatpush3.bf16.msra.mxu1 %v2280_v57 }
  0x3a   : > { %2252 = vmatpush1.bf16.msra.mxu0 %v2251_v40  ;;  %2285 = vmatprep.subr.bf16.mxu1 %v2284_v36  ;;  %v385_v40 = vld [vmem:[%s3257_s0 + $0x188] sm:$0xff] }
  0x3b   : > { %2253 = vmatprep.subr.bf16.mxu0 %v2549_v4  ;;  %v350_v4 = vld [vmem:[%s3257_s0 + $0x70] sm:$0xff] }
  0x3d   : > { %2287 = vmatpush3.bf16.msra.mxu1 %v2284_v36 }
  0x3e   : > { %2255 = vmatpush1.bf16.msra.mxu0 %v2254_v46 }
  0x41   : > { %559 = vmatmul.mubr.f32.vlgmr.msra.gmra.mrb[0].mxu0 %v336_v50 }
  0x42   : > { %2051 = vmatprep.mubr.msk.f32.mxu0 %vm415_vm0, %v339_v51 }
  0x45   : > { %564 = vmatmul.mubr.f32.gmra.mrb[2].mxu0 %v338_v55 }
  0x46   : > { %2052 = vmatprep.mubr.msk.f32.mxu0 %vm415_vm0, %v341_v56 }
  0x49   : > { %569 = vmatmul.mubr.f32.gmra.mrb[4].mxu0 %v340_v58 }
  0x4a   : > { %2053 = vmatprep.mubr.msk.f32.mxu0 %vm415_vm0, %v343_v59 }
  0x4d   : > { %574 = vmatmul.mubr.f32.gmra.mrb[6].mxu0 %v342_v60 }
  0x4e   : > { %2054 = vmatprep.mubr.msk.f32.mxu0 %vm415_vm0, %v345_v61 }
  0x51   : > { %579 = vmatmul.mubr.f32.gmra.mrb[8].mxu0 %v344_v62 }
  0x52   : > { %2055 = vmatprep.mubr.msk.f32.mxu0 %vm415_vm0, %v347_v63 }
  0x55   : > { %584 = vmatmul.mubr.f32.gmra.mrb[10].mxu0 %v346_v0 }
  0x56   : > { %2056 = vmatprep.mubr.msk.f32.mxu0 %vm415_vm0, %v349_v1 }
  0x59   : > { %589 = vmatmul.mubr.f32.gmra.mrb[12].mxu0 %v348_v2 }
  0x5a   : > { %2057 = vmatprep.mubr.msk.f32.mxu0 %vm415_vm0, %v351_v3 }
  0x5d   : > { %594 = vmatmul.mubr.f32.gmra.mrb[14].mxu0 %v350_v4 }
  0x5e   : > { %2058 = vmatprep.mubr.msk.f32.mxu0 %vm415_vm0, %v353_v5 }
  0x61   : > { %599 = vmatmul.mubr.f32.gmra.mrb[16].mxu0 %v352_v6 }
  0x62   : > { %2059 = vmatprep.mubr.msk.f32.mxu0 %vm415_vm0, %v355_v7 }
  0x65   : > { %604 = vmatmul.mubr.f32.gmra.mrb[18].mxu0 %v354_v8 }
  0x66   : > { %2060 = vmatprep.mubr.msk.f32.mxu0 %vm415_vm0, %v357_v9 }
  0x69   : > { %609 = vmatmul.mubr.f32.gmra.mrb[20].mxu0 %v356_v10 }
  0x6a   : > { %2061 = vmatprep.mubr.msk.f32.mxu0 %vm415_vm0, %v359_v11 }
  0x6d   : > { %614 = vmatmul.mubr.f32.gmra.mrb[22].mxu0 %v358_v12 }
  0x6e   : > { %2062 = vmatprep.mubr.msk.f32.mxu0 %vm415_vm0, %v361_v13 }
  0x71   : > { %619 = vmatmul.mubr.f32.gmra.mrb[24].mxu0 %v360_v14 }
  0x72   : > { %2063 = vmatprep.mubr.msk.f32.mxu0 %vm415_vm0, %v363_v15 }
  0x75   : > { %624 = vmatmul.mubr.f32.gmra.mrb[26].mxu0 %v362_v16 }
  0x76   : > { %2064 = vmatprep.mubr.msk.f32.mxu0 %vm415_vm0, %v365_v17 }
  0x79   : > { %629 = vmatmul.mubr.f32.gmra.mrb[28].mxu0 %v364_v18 }
  0x7a   : > { %2065 = vmatprep.mubr.msk.f32.mxu0 %vm415_vm0, %v367_v19 }
  0x7d   : > { %634 = vmatmul.mubr.f32.gmra.mrb[30].mxu0 %v366_v20 }
  0x7e   : > { %2066 = vmatprep.mubr.msk.f32.mxu0 %vm415_vm0, %v369_v21 }
  0x81   : > { %639 = vmatmul.mubr.f32.gmra.mrb[32].mxu0 %v368_v22 }
  0x82   : > { %2067 = vmatprep.mubr.msk.f32.mxu0 %vm415_vm0, %v371_v23 }
  0x85   : > { %644 = vmatmul.mubr.f32.gmra.mrb[34].mxu0 %v370_v24 }
  0x86   : > { %2068 = vmatprep.mubr.msk.f32.mxu0 %vm415_vm0, %v373_v25 }
  0x89   : > { %649 = vmatmul.mubr.f32.gmra.mrb[36].mxu0 %v372_v26 }
  0x8a   : > { %2069 = vmatprep.mubr.msk.f32.mxu0 %vm415_vm0, %v375_v27 }
  0x8d   : > { %654 = vmatmul.mubr.f32.gmra.mrb[38].mxu0 %v374_v28 }
  0x8e   : > { %2070 = vmatprep.mubr.msk.f32.mxu0 %vm415_vm0, %v377_v29 }
  0x91   : > { %659 = vmatmul.mubr.f32.gmra.mrb[40].mxu0 %v376_v30 }
  0x92   : > { %2071 = vmatprep.mubr.msk.f32.mxu0 %vm415_vm0, %v379_v31 }
  0x95   : > { %664 = vmatmul.mubr.f32.gmra.mrb[42].mxu0 %v378_v32 }
  0x96   : > { %2072 = vmatprep.mubr.msk.f32.mxu0 %vm415_vm0, %v381_v33 }
  0x99   : > { %669 = vmatmul.mubr.f32.gmra.mrb[44].mxu0 %v380_v37 }
  0x9a   : > { %2073 = vmatprep.mubr.msk.f32.mxu0 %vm415_vm0, %v383_v38 }
  0x9d   : > { %674 = vmatmul.mubr.f32.gmra.mrb[46].mxu0 %v382_v39 }
  0x9e   : > { %2074 = vmatprep.mubr.msk.f32.mxu0 %vm415_vm0, %v385_v40 }
  0xa1   : > { %679 = vmatmul.mubr.f32.gmra.mrb[48].mxu0 %v384_v41 }
  0xa2   : > { %2075 = vmatprep.mubr.msk.f32.mxu0 %vm415_vm0, %v387_v42 }
  0xa5   : > { %684 = vmatmul.mubr.f32.gmra.mrb[50].mxu0 %v386_v43 }
 0x114   : > { %v560_v45 = vpop.f32.mrb[0].mxu0 }
 0x115   : > { %v561_v46 = vadd.f32 %v2916_v44, %v560_v45  ;;  %v562_v47 = vpop.f32.mrb[1].mxu0 }
 0x117   : > { %908 = vst [vmem:[#allocation2] sm:$0xff] %v561_v46  ;;  %2187 = vmatprep.mubr.f32.mxu1 %v561_v46 }
 0x118   : > { %v565_v48 = vpop.f32.mrb[2].mxu0 }
 0x119   : > { %v566_v49 = vadd.f32 %v2916_v44, %v565_v48  ;;  %v567_v50 = vpop.f32.mrb[3].mxu0 }
 0x11b   : > { %909 = vst [vmem:[#allocation2 + $0x8] sm:$0xff] %v566_v49  ;;  %2188 = vmatmul.mubr.f32.vlgmr.msra.gmra.mrb[0].mxu1 %v566_v49 }
 0x11c   : > { %v570_v51 = vpop.f32.mrb[4].mxu0 }
 0x11d   : > { %v571_v52 = vadd.f32 %v2916_v44, %v570_v51  ;;  %v572_v53 = vpop.f32.mrb[5].mxu0 }
 0x11f   : > { %910 = vst [vmem:[#allocation2 + $0x10] sm:$0xff] %v571_v52  ;;  %2190 = vmatprep.mubr.f32.mxu1 %v571_v52 }
 0x120   : > { %v575_v54 = vpop.f32.mrb[6].mxu0 }
 0x121   : > { %v576_v55 = vadd.f32 %v2916_v44, %v575_v54  ;;  %v577_v56 = vpop.f32.mrb[7].mxu0 }
 0x123   : > { %911 = vst [vmem:[#allocation2 + $0x18] sm:$0xff] %v576_v55  ;;  %2191 = vmatmul.mubr.f32.gmra.mrb[2].mxu1 %v576_v55 }
 0x124   : > { %v580_v57 = vpop.f32.mrb[8].mxu0 }
 0x125   : > { %v581_v58 = vadd.f32 %v2916_v44, %v580_v57  ;;  %v582_v59 = vpop.f32.mrb[9].mxu0 }
 0x127   : > { %912 = vst [vmem:[#allocation2 + $0x20] sm:$0xff] %v581_v58  ;;  %2193 = vmatprep.mubr.f32.mxu1 %v581_v58 }
 0x128   : > { %v585_v60 = vpop.f32.mrb[10].mxu0 }
 0x129   : > { %v586_v61 = vadd.f32 %v2916_v44, %v585_v60  ;;  %v587_v62 = vpop.f32.mrb[11].mxu0  ;;  %v2947_v60 = vld [vmem:[%s3261_s4] ss:$0 sm:$0xff] }
 0x12b   : > { %913 = vst [vmem:[#allocation2 + $0x28] sm:$0xff] %v586_v61  ;;  %2194 = vmatmul.mubr.f32.gmra.mrb[4].mxu1 %v586_v61 }
 0x12c   : > { %v590_v63 = vpop.f32.mrb[12].mxu0 }
 0x12d   : > { %v591_v0 = vadd.f32 %v2916_v44, %v590_v63  ;;  %v592_v1 = vpop.f32.mrb[13].mxu0 }
 0x12f   : > { %914 = vst [vmem:[#allocation2 + $0x30] sm:$0xff] %v591_v0  ;;  %2196 = vmatprep.mubr.f32.mxu1 %v591_v0 }
 0x130   : > { %v595_v2 = vpop.f32.mrb[14].mxu0 }
 0x131   : > { %v596_v3 = vadd.f32 %v2916_v44, %v595_v2  ;;  %v597_v4 = vpop.f32.mrb[15].mxu0 }
 0x133   : > { %915 = vst [vmem:[#allocation2 + $0x38] sm:$0xff] %v596_v3  ;;  %2197 = vmatmul.mubr.f32.gmra.mrb[6].mxu1 %v596_v3 }
 0x134   : > { %v600_v5 = vpop.f32.mrb[16].mxu0 }
 0x135   : > { %v601_v6 = vadd.f32 %v2916_v44, %v600_v5  ;;  %v602_v7 = vpop.f32.mrb[17].mxu0 }
 0x137   : > { %916 = vst [vmem:[#allocation2 + $0x40] sm:$0xff] %v601_v6  ;;  %2199 = vmatprep.mubr.f32.mxu1 %v601_v6 }
 0x138   : > { %v605_v8 = vpop.f32.mrb[18].mxu0 }
 0x139   : > { %v606_v9 = vadd.f32 %v2916_v44, %v605_v8  ;;  %v607_v10 = vpop.f32.mrb[19].mxu0 }
 0x13b   : > { %917 = vst [vmem:[#allocation2 + $0x48] sm:$0xff] %v606_v9  ;;  %2200 = vmatmul.mubr.f32.gmra.mrb[8].mxu1 %v606_v9 }
 0x13c   : > { %v610_v11 = vpop.f32.mrb[20].mxu0 }
 0x13d   : > { %v611_v12 = vadd.f32 %v2916_v44, %v610_v11  ;;  %v612_v13 = vpop.f32.mrb[21].mxu0 }
 0x13f   : > { %918 = vst [vmem:[#allocation2 + $0x50] sm:$0xff] %v611_v12  ;;  %2202 = vmatprep.mubr.f32.mxu1 %v611_v12 }
 0x140   : > { %v615_v14 = vpop.f32.mrb[22].mxu0 }
 0x141   : > { %v616_v15 = vadd.f32 %v2916_v44, %v615_v14  ;;  %v617_v16 = vpop.f32.mrb[23].mxu0 }
 0x143   : > { %919 = vst [vmem:[#allocation2 + $0x58] sm:$0xff] %v616_v15  ;;  %2203 = vmatmul.mubr.f32.gmra.mrb[10].mxu1 %v616_v15 }
 0x144   : > { %v620_v17 = vpop.f32.mrb[24].mxu0 }
 0x145   : > { %v621_v18 = vadd.f32 %v2916_v44, %v620_v17  ;;  %v622_v19 = vpop.f32.mrb[25].mxu0 }
 0x147   : > { %920 = vst [vmem:[#allocation2 + $0x60] sm:$0xff] %v621_v18  ;;  %2205 = vmatprep.mubr.f32.mxu1 %v621_v18 }
 0x148   : > { %v625_v20 = vpop.f32.mrb[26].mxu0 }
 0x149   : > { %v626_v21 = vadd.f32 %v2916_v44, %v625_v20  ;;  %v627_v22 = vpop.f32.mrb[27].mxu0 }
 0x14b   : > { %921 = vst [vmem:[#allocation2 + $0x68] sm:$0xff] %v626_v21  ;;  %2206 = vmatmul.mubr.f32.gmra.mrb[12].mxu1 %v626_v21 }
 0x14c   : > { %v630_v23 = vpop.f32.mrb[28].mxu0 }
 0x14d   : > { %v631_v24 = vadd.f32 %v2916_v44, %v630_v23  ;;  %v632_v25 = vpop.f32.mrb[29].mxu0 }
 0x14f   : > { %922 = vst [vmem:[#allocation2 + $0x70] sm:$0xff] %v631_v24  ;;  %2208 = vmatprep.mubr.f32.mxu1 %v631_v24 }
 0x150   : > { %v635_v26 = vpop.f32.mrb[30].mxu0 }
 0x151   : > { %v636_v27 = vadd.f32 %v2916_v44, %v635_v26  ;;  %v637_v28 = vpop.f32.mrb[31].mxu0 }
 0x153   : > { %923 = vst [vmem:[#allocation2 + $0x78] sm:$0xff] %v636_v27  ;;  %2209 = vmatmul.mubr.f32.gmra.mrb[14].mxu1 %v636_v27 }
 0x154   : > { %v640_v29 = vpop.f32.mrb[32].mxu0 }
 0x155   : > { %v641_v30 = vadd.f32 %v2916_v44, %v640_v29  ;;  %v642_v31 = vpop.f32.mrb[33].mxu0 }
 0x157   : > { %924 = vst [vmem:[#allocation2 + $0x80] sm:$0xff] %v641_v30  ;;  %2211 = vmatprep.mubr.f32.mxu1 %v641_v30 }
 0x158   : > { %v645_v32 = vpop.f32.mrb[34].mxu0 }
 0x159   : > { %v646_v33 = vadd.f32 %v2916_v44, %v645_v32  ;;  %v647_v34 = vpop.f32.mrb[35].mxu0 }
 0x15b   : > { %925 = vst [vmem:[#allocation2 + $0x88] sm:$0xff] %v646_v33  ;;  %2212 = vmatmul.mubr.f32.gmra.mrb[16].mxu1 %v646_v33 }
 0x15c   : > { %v650_v35 = vpop.f32.mrb[36].mxu0 }
 0x15d   : > { %v651_v36 = vadd.f32 %v2916_v44, %v650_v35  ;;  %v652_v37 = vpop.f32.mrb[37].mxu0 }
 0x15f   : > { %926 = vst [vmem:[#allocation2 + $0x90] sm:$0xff] %v651_v36  ;;  %2214 = vmatprep.mubr.f32.mxu1 %v651_v36 }
 0x160   : > { %v655_v38 = vpop.f32.mrb[38].mxu0 }
 0x161   : > { %v656_v39 = vadd.f32 %v2916_v44, %v655_v38  ;;  %v657_v40 = vpop.f32.mrb[39].mxu0 }
 0x163   : > { %927 = vst [vmem:[#allocation2 + $0x98] sm:$0xff] %v656_v39  ;;  %2215 = vmatmul.mubr.f32.gmra.mrb[18].mxu1 %v656_v39 }
 0x164   : > { %v660_v41 = vpop.f32.mrb[40].mxu0 }
 0x165   : > { %v661_v42 = vadd.f32 %v2916_v44, %v660_v41  ;;  %v662_v43 = vpop.f32.mrb[41].mxu0 }
 0x167   : > { %928 = vst [vmem:[#allocation2 + $0xa0] sm:$0xff] %v661_v42  ;;  %2217 = vmatprep.mubr.f32.mxu1 %v661_v42 }
 0x168   : > { %v665_v45 = vpop.f32.mrb[42].mxu0 }
 0x169   : > { %v666_v46 = vadd.f32 %v2916_v44, %v665_v45  ;;  %v667_v47 = vpop.f32.mrb[43].mxu0 }
 0x16b   : > { %929 = vst [vmem:[#allocation2 + $0xa8] sm:$0xff] %v666_v46  ;;  %2218 = vmatmul.mubr.f32.gmra.mrb[20].mxu1 %v666_v46 }
 0x16c   : > { %v670_v48 = vpop.f32.mrb[44].mxu0 }
 0x16d   : > { %v671_v49 = vadd.f32 %v2916_v44, %v670_v48  ;;  %v672_v50 = vpop.f32.mrb[45].mxu0 }
 0x16f   : > { %930 = vst [vmem:[#allocation2 + $0xb0] sm:$0xff] %v671_v49  ;;  %2220 = vmatprep.mubr.f32.mxu1 %v671_v49 }
 0x170   : > { %v675_v51 = vpop.f32.mrb[46].mxu0 }
 0x171   : > { %v676_v52 = vadd.f32 %v2916_v44, %v675_v51  ;;  %v677_v53 = vpop.f32.mrb[47].mxu0 }
 0x173   : > { %931 = vst [vmem:[#allocation2 + $0xb8] sm:$0xff] %v676_v52  ;;  %2221 = vmatmul.mubr.f32.gmra.mrb[22].mxu1 %v676_v52 }
 0x174   : > { %v680_v54 = vpop.f32.mrb[48].mxu0 }
 0x175   : > { %v681_v55 = vadd.f32 %v2916_v44, %v680_v54  ;;  %v682_v56 = vpop.f32.mrb[49].mxu0 }
 0x177   : > { %932 = vst [vmem:[#allocation2 + $0xc0] sm:$0xff] %v681_v55  ;;  %2223 = vmatprep.mubr.f32.mxu1 %v681_v55 }
 0x178   : > { %v685_v57 = vpop.f32.mrb[50].mxu0 }
 0x179   : > { %v686_v58 = vadd.f32 %v2916_v44, %v685_v57  ;;  %v687_v59 = vpop.f32.mrb[51].mxu0 }
 0x17b   : > { %933 = vst [vmem:[#allocation2 + $0xc8] sm:$0xff] %v686_v58  ;;  %2224 = vmatmul.mubr.f32.gmra.mrb[24].mxu1 %v686_v58 }
 0x1ee   : > { %v2189_v61 = vpop.f32.mrb[0].mxu1 }
 0x1ef   : > { %v784_v62 = vadd.f32 %v2189_v61, %v2947_v60  ;;  %v778_v63 = vpop.f32.mrb[1].mxu1 }
 0x1f0   : > { %v779_v0 = vadd.f32 %v2947_v60, %v778_v63 }
 0x1f1   : > { %936 = vst [vmem:[#allocation3 + $0x8] sm:$0xff] %v784_v62  ;;  %v1155_v1 = vmul.f32 %v784_v62, %v784_v62 }
 0x1f2   : > { %935 = vst [vmem:[#allocation3] sm:$0xff] %v779_v0  ;;  %v1120_v2 = vadd.f32 %v784_v62, %v779_v0  ;;  %v1154_v3 = vmul.f32 %v779_v0, %v779_v0 }
 0x1f4   : > { %v1180_v44 = vadd.f32 %v1155_v1, %v1154_v3 }
 0x1f6   : > { %v2192_v4 = vpop.f32.mrb[2].mxu1 }
 0x1f7   : > { %v794_v5 = vadd.f32 %v2192_v4, %v2947_v60  ;;  %v788_v6 = vpop.f32.mrb[3].mxu1 }
 0x1f8   : > { %v789_v7 = vadd.f32 %v2947_v60, %v788_v6 }
 0x1f9   : > { %938 = vst [vmem:[#allocation3 + $0x18] sm:$0xff] %v794_v5  ;;  %v1157_v10 = vmul.f32 %v794_v5, %v794_v5 }
 0x1fa   : > { %937 = vst [vmem:[#allocation3 + $0x10] sm:$0xff] %v789_v7  ;;  %v1121_v8 = vadd.f32 %v1120_v2, %v789_v7  ;;  %v1156_v9 = vmul.f32 %v789_v7, %v789_v7 }
 0x1fc   : > { %v1181_v11 = vadd.f32 %v1180_v44, %v1156_v9  ;;  %v1122_v12 = vadd.f32 %v1121_v8, %v794_v5 }
 0x1fe   : > { %v2195_v13 = vpop.f32.mrb[4].mxu1  ;;  %v1182_v14 = vadd.f32 %v1181_v11, %v1157_v10 }
 0x1ff   : > { %v804_v15 = vadd.f32 %v2195_v13, %v2947_v60  ;;  %v798_v16 = vpop.f32.mrb[5].mxu1 }
 0x200   : > { %v799_v17 = vadd.f32 %v2947_v60, %v798_v16 }
 0x201   : > { %940 = vst [vmem:[#allocation3 + $0x28] sm:$0xff] %v804_v15  ;;  %v1159_v20 = vmul.f32 %v804_v15, %v804_v15 }
 0x202   : > { %939 = vst [vmem:[#allocation3 + $0x20] sm:$0xff] %v799_v17  ;;  %v1123_v18 = vadd.f32 %v1122_v12, %v799_v17  ;;  %v1158_v19 = vmul.f32 %v799_v17, %v799_v17 }
 0x204   : > { %v1183_v21 = vadd.f32 %v1182_v14, %v1158_v19  ;;  %v1124_v22 = vadd.f32 %v1123_v18, %v804_v15 }
 0x206   : > { %v2198_v23 = vpop.f32.mrb[6].mxu1  ;;  %v1184_v24 = vadd.f32 %v1183_v21, %v1159_v20 }
 0x207   : > { %v814_v25 = vadd.f32 %v2198_v23, %v2947_v60  ;;  %v808_v26 = vpop.f32.mrb[7].mxu1 }
 0x208   : > { %v809_v27 = vadd.f32 %v2947_v60, %v808_v26 }
 0x209   : > { %942 = vst [vmem:[#allocation3 + $0x38] sm:$0xff] %v814_v25  ;;  %v1161_v30 = vmul.f32 %v814_v25, %v814_v25 }
 0x20a   : > { %941 = vst [vmem:[#allocation3 + $0x30] sm:$0xff] %v809_v27  ;;  %v1125_v28 = vadd.f32 %v1124_v22, %v809_v27  ;;  %v1160_v29 = vmul.f32 %v809_v27, %v809_v27 }
 0x20c   : > { %v1185_v31 = vadd.f32 %v1184_v24, %v1160_v29  ;;  %v1126_v32 = vadd.f32 %v1125_v28, %v814_v25 }
 0x20e   : > { %v2201_v33 = vpop.f32.mrb[8].mxu1  ;;  %v1186_v34 = vadd.f32 %v1185_v31, %v1161_v30 }
 0x20f   : > { %v824_v35 = vadd.f32 %v2201_v33, %v2947_v60  ;;  %v818_v36 = vpop.f32.mrb[9].mxu1 }
 0x210   : > { %v819_v37 = vadd.f32 %v2947_v60, %v818_v36 }
 0x211   : > { %944 = vst [vmem:[#allocation3 + $0x48] sm:$0xff] %v824_v35  ;;  %v1163_v40 = vmul.f32 %v824_v35, %v824_v35 }
 0x212   : > { %943 = vst [vmem:[#allocation3 + $0x40] sm:$0xff] %v819_v37  ;;  %v1127_v38 = vadd.f32 %v1126_v32, %v819_v37  ;;  %v1162_v39 = vmul.f32 %v819_v37, %v819_v37 }
 0x214   : > { %v1187_v41 = vadd.f32 %v1186_v34, %v1162_v39  ;;  %v1128_v42 = vadd.f32 %v1127_v38, %v824_v35 }
 0x216   : > { %v2204_v43 = vpop.f32.mrb[10].mxu1  ;;  %v1188_v45 = vadd.f32 %v1187_v41, %v1163_v40 }
 0x217   : > { %v834_v46 = vadd.f32 %v2204_v43, %v2947_v60  ;;  %v828_v47 = vpop.f32.mrb[11].mxu1 }
 0x218   : > { %v829_v48 = vadd.f32 %v2947_v60, %v828_v47 }
 0x219   : > { %946 = vst [vmem:[#allocation3 + $0x58] sm:$0xff] %v834_v46  ;;  %v1165_v51 = vmul.f32 %v834_v46, %v834_v46 }
 0x21a   : > { %945 = vst [vmem:[#allocation3 + $0x50] sm:$0xff] %v829_v48  ;;  %v1129_v49 = vadd.f32 %v1128_v42, %v829_v48  ;;  %v1164_v50 = vmul.f32 %v829_v48, %v829_v48 }
 0x21c   : > { %v1189_v52 = vadd.f32 %v1188_v45, %v1164_v50  ;;  %v1130_v53 = vadd.f32 %v1129_v49, %v834_v46 }
 0x21e   : > { %v2207_v54 = vpop.f32.mrb[12].mxu1  ;;  %v1190_v55 = vadd.f32 %v1189_v52, %v1165_v51 }
 0x21f   : > { %v844_v56 = vadd.f32 %v2207_v54, %v2947_v60  ;;  %v838_v57 = vpop.f32.mrb[13].mxu1 }
 0x220   : > { %v839_v58 = vadd.f32 %v2947_v60, %v838_v57 }
 0x221   : > { %948 = vst [vmem:[#allocation3 + $0x68] sm:$0xff] %v844_v56  ;;  %v1167_v62 = vmul.f32 %v844_v56, %v844_v56 }
 0x222   : > { %947 = vst [vmem:[#allocation3 + $0x60] sm:$0xff] %v839_v58  ;;  %v1131_v59 = vadd.f32 %v1130_v53, %v839_v58  ;;  %v1166_v61 = vmul.f32 %v839_v58, %v839_v58 }
 0x224   : > { %v1191_v63 = vadd.f32 %v1190_v55, %v1166_v61  ;;  %v1132_v0 = vadd.f32 %v1131_v59, %v844_v56 }
 0x226   : > { %v2210_v1 = vpop.f32.mrb[14].mxu1  ;;  %v1192_v2 = vadd.f32 %v1191_v63, %v1167_v62 }
 0x227   : > { %v854_v3 = vadd.f32 %v2210_v1, %v2947_v60  ;;  %v848_v44 = vpop.f32.mrb[15].mxu1 }
 0x228   : > { %v849_v4 = vadd.f32 %v2947_v60, %v848_v44 }
 0x229   : > { %950 = vst [vmem:[#allocation3 + $0x78] sm:$0xff] %v854_v3  ;;  %v1169_v7 = vmul.f32 %v854_v3, %v854_v3 }
 0x22a   : > { %949 = vst [vmem:[#allocation3 + $0x70] sm:$0xff] %v849_v4  ;;  %v1133_v5 = vadd.f32 %v1132_v0, %v849_v4  ;;  %v1168_v6 = vmul.f32 %v849_v4, %v849_v4  ;;  %v1119_v4 = vld [vmem:[#allocation4] sm:$0x1] }
 0x22c   : > { %v1193_v8 = vadd.f32 %v1192_v2, %v1168_v6  ;;  %v1134_v9 = vadd.f32 %v1133_v5, %v854_v3 }
 0x22e   : > { %v2213_v10 = vpop.f32.mrb[16].mxu1  ;;  %v1194_v11 = vadd.f32 %v1193_v8, %v1169_v7  ;;  %v1153_v7 = vld [vmem:[#allocation4 + $0x1] sm:$0x1] }
 0x22f   : > { %v864_v12 = vadd.f32 %v2213_v10, %v2947_v60  ;;  %v858_v13 = vpop.f32.mrb[17].mxu1 }
 0x230   : > { %v859_v14 = vadd.f32 %v2947_v60, %v858_v13 }
 0x231   : > { %952 = vst [vmem:[#allocation3 + $0x88] sm:$0xff] %v864_v12  ;;  %v1171_v17 = vmul.f32 %v864_v12, %v864_v12 }
 0x232   : > { %951 = vst [vmem:[#allocation3 + $0x80] sm:$0xff] %v859_v14  ;;  %v1135_v15 = vadd.f32 %v1134_v9, %v859_v14  ;;  %v1170_v16 = vmul.f32 %v859_v14, %v859_v14 }
 0x234   : > { %v1195_v18 = vadd.f32 %v1194_v11, %v1170_v16  ;;  %v1136_v19 = vadd.f32 %v1135_v15, %v864_v12 }
 0x236   : > { %v2216_v20 = vpop.f32.mrb[18].mxu1  ;;  %v1196_v21 = vadd.f32 %v1195_v18, %v1171_v17 }
 0x237   : > { %v874_v22 = vadd.f32 %v2216_v20, %v2947_v60  ;;  %v868_v23 = vpop.f32.mrb[19].mxu1 }
 0x238   : > { %v869_v24 = vadd.f32 %v2947_v60, %v868_v23 }
 0x239   : > { %954 = vst [vmem:[#allocation3 + $0x98] sm:$0xff] %v874_v22  ;;  %v1173_v27 = vmul.f32 %v874_v22, %v874_v22 }
 0x23a   : > { %953 = vst [vmem:[#allocation3 + $0x90] sm:$0xff] %v869_v24  ;;  %v1137_v25 = vadd.f32 %v1136_v19, %v869_v24  ;;  %v1172_v26 = vmul.f32 %v869_v24, %v869_v24 }
 0x23c   : > { %v1197_v28 = vadd.f32 %v1196_v21, %v1172_v26  ;;  %v1138_v29 = vadd.f32 %v1137_v25, %v874_v22 }
 0x23e   : > { %v2219_v30 = vpop.f32.mrb[20].mxu1  ;;  %v1198_v31 = vadd.f32 %v1197_v28, %v1173_v27 }
 0x23f   : > { %v884_v32 = vadd.f32 %v2219_v30, %v2947_v60  ;;  %v878_v33 = vpop.f32.mrb[21].mxu1 }
 0x240   : > { %v879_v34 = vadd.f32 %v2947_v60, %v878_v33 }
 0x241   : > { %956 = vst [vmem:[#allocation3 + $0xa8] sm:$0xff] %v884_v32  ;;  %v1175_v37 = vmul.f32 %v884_v32, %v884_v32 }
 0x242   : > { %955 = vst [vmem:[#allocation3 + $0xa0] sm:$0xff] %v879_v34  ;;  %v1139_v35 = vadd.f32 %v1138_v29, %v879_v34  ;;  %v1174_v36 = vmul.f32 %v879_v34, %v879_v34 }
 0x244   : > { %v1199_v38 = vadd.f32 %v1198_v31, %v1174_v36  ;;  %v1140_v39 = vadd.f32 %v1139_v35, %v884_v32 }
 0x246   : > { %v2222_v40 = vpop.f32.mrb[22].mxu1  ;;  %v1200_v41 = vadd.f32 %v1199_v38, %v1175_v37 }
 0x247   : > { %v894_v42 = vadd.f32 %v2222_v40, %v2947_v60  ;;  %v888_v43 = vpop.f32.mrb[23].mxu1 }
 0x248   : > { %v889_v45 = vadd.f32 %v2947_v60, %v888_v43 }
 0x249   : > { %958 = vst [vmem:[#allocation3 + $0xb8] sm:$0xff] %v894_v42  ;;  %v1177_v48 = vmul.f32 %v894_v42, %v894_v42 }
 0x24a   : > { %957 = vst [vmem:[#allocation3 + $0xb0] sm:$0xff] %v889_v45  ;;  %v1141_v46 = vadd.f32 %v1140_v39, %v889_v45  ;;  %v1176_v47 = vmul.f32 %v889_v45, %v889_v45 }
 0x24c   : > { %v1201_v49 = vadd.f32 %v1200_v41, %v1176_v47  ;;  %v1142_v50 = vadd.f32 %v1141_v46, %v894_v42 }
 0x24e   : > { %v2225_v51 = vpop.f32.mrb[24].mxu1  ;;  %v1202_v52 = vadd.f32 %v1201_v49, %v1177_v48 }
 0x24f   : > { %v904_v53 = vadd.f32 %v2225_v51, %v2947_v60  ;;  %v898_v54 = vpop.f32.mrb[25].mxu1 }
 0x250   : > { %v899_v55 = vadd.f32 %v2947_v60, %v898_v54 }
 0x251   : > { %960 = vst [vmem:[#allocation3 + $0xc8] sm:$0xff] %v904_v53 }
 0x252   : > { %959 = vst [vmem:[#allocation3 + $0xc0] sm:$0xff] %v899_v55  ;;  %v1143_v56 = vadd.f32 %v1142_v50, %v899_v55  ;;  %v1178_v57 = vmul.f32 %v899_v55, %v899_v55 }
 0x254   : > { %v1145_v58 = vrot.slane %v1143_v56, 4  ;;  %v1203_v59 = vadd.f32 %v1202_v52, %v1178_v57 }
 0x256   : > { %v1146_v61 = vadd.f32 %v1145_v58, %v1143_v56  ;;  %v1205_v62 = vrot.slane %v1203_v59, 4 }
 0x258   : > { %v1147_v63 = vrot.slane %v1146_v61, 2  ;;  %v1206_v0 = vadd.f32 %v1205_v62, %v1203_v59 }
 0x25a   : > { %v1148_v1 = vadd.f32 %v1147_v63, %v1146_v61  ;;  %v1207_v2 = vrot.slane %v1206_v0, 2 }
 0x25c   : > { %v1149_v3 = vrot.slane %v1148_v1, 1  ;;  %v1208_v44 = vadd.f32 %v1207_v2, %v1206_v0 }
 0x25e   : > { %v1150_v5 = vadd.f32 %v1149_v3, %v1148_v1  ;;  %v1209_v6 = vrot.slane %v1208_v44, 1 }
 0x260   : > { %v1151_v8 = vadd.f32 %v1150_v5, %v1119_v4  ;;  %v1210_v60 = vadd.f32 %v1209_v6, %v1208_v44 }
 0x262   : > { %1152 = vst [vmem:[#allocation4] sm:$0x1] %v1151_v8  ;;  %v1211_v9 = vadd.f32 %v1210_v60, %v1153_v7 }
 0x264   : > { %1212 = vst [vmem:[#allocation4 + $0x1] sm:$0x1] %v1211_v9 }
 0x265 PF: > { %p2077_p6 = scmp.ne.s32.totalorder %s2534_s24, 1 }
 0x266   : > { %v1286_v18 = vlaneseq (!%p2077_p6)  ;;  %v1278_v20 = vld [vmem:[%s3262_s5] sm:$0x1] (!%p2077_p6)  ;;  %v1245_v26 = vld [vmem:[#allocation3] sm:$0xff] (!%p2077_p6)  ;;  %v1248_v27 = vld [vmem:[#allocation3 + $0x18] sm:$0xff] (!%p2077_p6) }
 0x267   : > { %1216 = sbr.rel (%p2077_p6) target bundleno = 887 (0x377), region = 60  ;;  %v1247_v23 = vld [vmem:[#allocation3 + $0x10] sm:$0xff] (!%p2077_p6)  ;;  %v1246_v30 = vld [vmem:[#allocation3 + $0x8] sm:$0xff] (!%p2077_p6)  ;;  %v1249_v32 = vld [vmem:[#allocation3 + $0x20] sm:$0xff] (!%p2077_p6) }
 0x268   : > { %v1287_v19 = vshrl.u32 (!%p2077_p6), %v1286_v18, 7  ;;  %v1282_v25 = vld [vmem:[%s3263_s6] sm:$0x1] (!%p2077_p6)  ;;  %v1250_v31 = vld [vmem:[#allocation3 + $0x28] sm:$0xff] (!%p2077_p6)  ;;  %v1252_v33 = vld [vmem:[#allocation3 + $0x38] sm:$0xff] (!%p2077_p6) }
 0x269   : > { %v1271_v10 = vld [vmem:[#allocation4] sm:$0x1] (!%p2077_p6)  ;;  %v1254_v39 = vld [vmem:[#allocation3 + $0x48] sm:$0xff] (!%p2077_p6)  ;;  %v1253_v46 = vld [vmem:[#allocation3 + $0x40] sm:$0xff] (!%p2077_p6) }
 0x26a   : > { %v1272_v11 = vmul.f32 (!%p2077_p6), 0.005, %v1271_v10  ;;  %v1288_v21 = vsub.s32 (!%p2077_p6), 0, %v1287_v19  ;;  %v1251_v38 = vld [vmem:[#allocation3 + $0x30] sm:$0xff] (!%p2077_p6)  ;;  %v1256_v47 = vld [vmem:[#allocation3 + $0x58] sm:$0xff] (!%p2077_p6)  ;;  %v1258_v59 = vld [vmem:[#allocation3 + $0x68] sm:$0xff] (!%p2077_p6) }
 0x26b   : > { %v1273_v12 = vld [vmem:[#allocation4 + $0x1] sm:$0x1] (!%p2077_p6)  ;;  %v1260_v19 = vld [vmem:[#allocation3 + $0x78] sm:$0xff] (!%p2077_p6) }
 0x26c   : > { %v1274_v13 = vmul.f32 (!%p2077_p6), 0.005, %v1273_v12  ;;  %v1275_v14 = vmul.f32 (!%p2077_p6), %v1272_v11, %v1272_v11  ;;  %v1255_v54 = vld [vmem:[#allocation3 + $0x50] sm:$0xff] (!%p2077_p6) }
 0x26e   : > { %v1276_v15 = vsub.f32 %v1274_v13, %v1275_v14  ;;  %v1257_v14 = vld [vmem:[#allocation3 + $0x60] sm:$0xff] }
 0x270   : > { %v1277_v16 = vmax.f32 %v1276_v15, 0.0 }
 0x272   : > { %v1279_v17 = vadd.f32 1e-05, %v1277_v16 }
 0x274   : > { %2346 = vrsqrt.f32 %v1279_v17 }
 0x27e   : > { %v2347_v22 = vpop.eup %2346 }
 0x27f   : > { %v1281_v24 = vmul.f32 %v2347_v22, %v1278_v20  ;;  %v1259_v20 = vld [vmem:[#allocation3 + $0x70] sm:$0xff]  ;;  %v1262_v22 = vld [vmem:[#allocation3 + $0x88] sm:$0xff] }
 0x281   : > { %v1283_v28 = vmul.f32 %v1281_v24, %v1272_v11  ;;  %v2982_v29 = vrot.slane %v1281_v24, %v1288_v21 }
 0x283   : > { %v1284_v34 = vsub.f32 %v1282_v25, %v1283_v28  ;;  %v1293_v35 = vmul.f32 %v2982_v29, %v1247_v23  ;;  %v1291_v36 = vmul.f32 %v2982_v29, %v1245_v26  ;;  %v1294_v37 = vmul.f32 %v2982_v29, %v1248_v27  ;;  %v1261_v26 = vld [vmem:[#allocation3 + $0x80] sm:$0xff]  ;;  %v1264_v27 = vld [vmem:[#allocation3 + $0x98] sm:$0xff] }
 0x284   : > { %v1292_v40 = vmul.f32 %v2982_v29, %v1246_v30  ;;  %v1296_v41 = vmul.f32 %v2982_v29, %v1250_v31  ;;  %v1295_v42 = vmul.f32 %v2982_v29, %v1249_v32  ;;  %v1298_v45 = vmul.f32 %v2982_v29, %v1252_v33  ;;  %v1263_v33 = vld [vmem:[#allocation3 + $0x90] sm:$0xff] }
 0x285   : > { %v2990_v43 = vrot.slane %v1284_v34, %v1288_v21  ;;  %v1297_v48 = vmul.f32 %v2982_v29, %v1251_v38  ;;  %v1300_v49 = vmul.f32 %v2982_v29, %v1254_v39  ;;  %v1299_v57 = vmul.f32 %v2982_v29, %v1253_v46 }
 0x286   : > { %v1302_v58 = vmul.f32 %v2982_v29, %v1256_v47  ;;  %v1301_v3 = vmul.f32 %v2982_v29, %v1255_v54  ;;  %v1304_v5 = vmul.f32 %v2982_v29, %v1258_v59  ;;  %v1303_v18 = vmul.f32 %v2982_v29, %v1257_v14 }
 0x287   : > { %v1325_v50 = vadd.f32 %v2990_v43, %v1293_v35  ;;  %v1323_v51 = vadd.f32 %v2990_v43, %v1291_v36  ;;  %v1326_v52 = vadd.f32 %v2990_v43, %v1294_v37  ;;  %v1324_v53 = vadd.f32 %v2990_v43, %v1292_v40 }
 0x288   : > { %v1328_v55 = vadd.f32 %v2990_v43, %v1296_v41  ;;  %v1327_v56 = vadd.f32 %v2990_v43, %v1295_v42  ;;  %v1330_v0 = vadd.f32 %v2990_v43, %v1298_v45  ;;  %v1329_v2 = vadd.f32 %v2990_v43, %v1297_v48  ;;  %v1266_v41 = vld [vmem:[#allocation3 + $0xa8] sm:$0xff] }
 0x289   : > { %v2080_v61 = vmul.f32 -1.442695, %v1325_v50  ;;  %v2078_v62 = vmul.f32 -1.442695, %v1323_v51  ;;  %v2081_v63 = vmul.f32 -1.442695, %v1326_v52  ;;  %v1332_v4 = vadd.f32 %v2990_v43, %v1300_v49 }
 0x28a   : > { %v2079_v1 = vmul.f32 -1.442695, %v1324_v53  ;;  %v2083_v44 = vmul.f32 -1.442695, %v1328_v55  ;;  %v2082_v6 = vmul.f32 -1.442695, %v1327_v56  ;;  %v1331_v7 = vadd.f32 %v2990_v43, %v1299_v57 }
 0x28b   : > { %2348 = vpow2.f32 %v2080_v61  ;;  %v2085_v8 = vmul.f32 -1.442695, %v1330_v0  ;;  %v1334_v60 = vadd.f32 %v2990_v43, %v1302_v58  ;;  %v2084_v9 = vmul.f32 -1.442695, %v1329_v2  ;;  %v1265_v56 = vld [vmem:[#allocation3 + $0xa0] sm:$0xff] }
 0x28c   : > { %2350 = vpow2.f32 %v2078_v62  ;;  %v1333_v10 = vadd.f32 %v2990_v43, %v1301_v3  ;;  %v2087_v11 = vmul.f32 -1.442695, %v1332_v4  ;;  %v1336_v12 = vadd.f32 %v2990_v43, %v1304_v5  ;;  %v1268_v5 = vld [vmem:[#allocation3 + $0xb8] sm:$0xff] }
 0x28d   : > { %2352 = vpow2.f32 %v2081_v63  ;;  %v2086_v13 = vmul.f32 -1.442695, %v1331_v7  ;;  %v2089_v15 = vmul.f32 -1.442695, %v1334_v60  ;;  %v1306_v25 = vmul.f32 %v2982_v29, %v1260_v19  ;;  %v1220_v7 = vld [vmem:[#allocation2 + $0x10] sm:$0xff] }
 0x28e   : > { %2354 = vpow2.f32 %v2079_v1  ;;  %v2088_v16 = vmul.f32 -1.442695, %v1333_v10  ;;  %v2091_v17 = vmul.f32 -1.442695, %v1336_v12  ;;  %v1335_v31 = vadd.f32 %v2990_v43, %v1303_v18  ;;  %v1221_v18 = vld [vmem:[#allocation2 + $0x18] sm:$0xff] }
 0x28f   : > { %2356 = vpow2.f32 %v2083_v44  ;;  %v1305_v32 = vmul.f32 %v2982_v29, %v1259_v20  ;;  %v1308_v36 = vmul.f32 %v2982_v29, %v1262_v22  ;;  %v1307_v39 = vmul.f32 %v2982_v29, %v1261_v26  ;;  %v1269_v22 = vld [vmem:[#allocation3 + $0xc0] sm:$0xff] }
 0x290   : > { %2358 = vpow2.f32 %v2082_v6  ;;  %v1310_v40 = vmul.f32 %v2982_v29, %v1264_v27  ;;  %v1338_v46 = vadd.f32 %v2990_v43, %v1306_v25  ;;  %v1309_v47 = vmul.f32 %v2982_v29, %v1263_v33  ;;  %v1219_v25 = vld [vmem:[#allocation2 + $0x8] sm:$0xff] }
 0x291   : > { %2360 = vpow2.f32 %v2085_v8  ;;  %v2090_v50 = vmul.f32 -1.442695, %v1335_v31  ;;  %v1337_v51 = vadd.f32 %v2990_v43, %v1305_v32  ;;  %v1340_v54 = vadd.f32 %v2990_v43, %v1308_v36  ;;  %v1218_v8 = vld [vmem:[#allocation2] sm:$0xff]  ;;  %v1223_v31 = vld [vmem:[#allocation2 + $0x28] sm:$0xff] }
 0x292   : > { %2362 = vpow2.f32 %v2084_v9  ;;  %v1312_v55 = vmul.f32 %v2982_v29, %v1266_v41  ;;  %v1339_v59 = vadd.f32 %v2990_v43, %v1307_v39  ;;  %v1342_v61 = vadd.f32 %v2990_v43, %v1310_v40 }
 0x293   : > { %2364 = vpow2.f32 %v2087_v11  ;;  %v2093_v0 = vmul.f32 -1.442695, %v1338_v46  ;;  %v1341_v1 = vadd.f32 %v2990_v43, %v1309_v47  ;;  %v2092_v44 = vmul.f32 -1.442695, %v1337_v51  ;;  %v1267_v11 = vld [vmem:[#allocation3 + $0xb0] sm:$0xff]  ;;  %v1225_v51 = vld [vmem:[#allocation2 + $0x38] sm:$0xff] }
 0x294   : > { %2366 = vpow2.f32 %v2086_v13  ;;  %v1311_v4 = vmul.f32 %v2982_v29, %v1265_v56  ;;  %v2095_v9 = vmul.f32 -1.442695, %v1340_v54  ;;  %v1344_v10 = vadd.f32 %v2990_v43, %v1312_v55  ;;  %v1224_v54 = vld [vmem:[#allocation2 + $0x30] sm:$0xff] }
 0x295   : > { %v2349_v21 = vpop.eup %2348  ;;  %2368 = vpow2.f32 %v2089_v15  ;;  %v2094_v14 = vmul.f32 -1.442695, %v1339_v59  ;;  %v2097_v15 = vmul.f32 -1.442695, %v1342_v61  ;;  %v2096_v20 = vmul.f32 -1.442695, %v1341_v1 }
 0x296   : > { %v2351_v23 = vpop.eup %2350  ;;  %v1429_v24 = vadd.f32 1.0, %v2349_v21  ;;  %2370 = vpow2.f32 %v2088_v16  ;;  %v1270_v16 = vld [vmem:[#allocation3 + $0xc8] sm:$0xff]  ;;  %v1314_v21 = vmul.f32 %v2982_v29, %v1268_v5  ;;  %v1343_v26 = vadd.f32 %v2990_v43, %v1311_v4  ;;  %v1226_v4 = vld [vmem:[#allocation2 + $0x40] sm:$0xff] }
 0x297   : > { %v2353_v28 = vpop.eup %2352  ;;  %v1427_v30 = vadd.f32 1.0, %v2351_v23  ;;  %2372 = vpow2.f32 %v2091_v17  ;;  %v1313_v27 = vmul.f32 %v2982_v29, %v1267_v11  ;;  %v2099_v32 = vmul.f32 -1.442695, %v1344_v10 }
 0x298   : > { %v2355_v34 = vpop.eup %2354  ;;  %2374 = vrcp.f32 %v1429_v24  ;;  %v1430_v35 = vadd.f32 1.0, %v2353_v28  ;;  %v1316_v33 = vmul.f32 %v2982_v29, %v1270_v16  ;;  %v2098_v55 = vmul.f32 -1.442695, %v1343_v26 }
 0x299   : > { %v2357_v37 = vpop.eup %2356  ;;  %2376 = vrcp.f32 %v1427_v30  ;;  %v1428_v38 = vadd.f32 1.0, %v2355_v34 }
 0x29a   : > { %v2359_v42 = vpop.eup %2358  ;;  %2378 = vrcp.f32 %v1430_v35  ;;  %v1432_v45 = vadd.f32 1.0, %v2357_v37  ;;  %v1222_v37 = vld [vmem:[#allocation2 + $0x20] sm:$0xff] }
 0x29b   : > { %v2361_v48 = vpop.eup %2360  ;;  %2380 = vrcp.f32 %v1428_v38  ;;  %v1431_v49 = vadd.f32 1.0, %v2359_v42  ;;  %v1315_v38 = vmul.f32 %v2982_v29, %v1269_v22  ;;  %v1346_v42 = vadd.f32 %v2990_v43, %v1314_v21 }
 0x29c   : > { %v2363_v52 = vpop.eup %2362  ;;  %2382 = vrcp.f32 %v1432_v45  ;;  %v1434_v53 = vadd.f32 1.0, %v2361_v48  ;;  %v1345_v48 = vadd.f32 %v2990_v43, %v1313_v27  ;;  %v1231_v27 = vld [vmem:[#allocation2 + $0x68] sm:$0xff] }
 0x29d   : > { %v2365_v57 = vpop.eup %2364  ;;  %2384 = vrcp.f32 %v1431_v49  ;;  %v1433_v58 = vadd.f32 1.0, %v2363_v52  ;;  %v1348_v52 = vadd.f32 %v2990_v43, %v1316_v33  ;;  %v1347_v56 = vadd.f32 %v2990_v43, %v1315_v38  ;;  %v1227_v43 = vld [vmem:[#allocation2 + $0x48] sm:$0xff] }
 0x29e   : > { %v2367_v62 = vpop.eup %2366  ;;  %2386 = vrcp.f32 %v1434_v53  ;;  %v1436_v63 = vadd.f32 1.0, %v2365_v57 }
 0x29f   : > { %v2369_v2 = vpop.eup %2368  ;;  %2388 = vrcp.f32 %v1433_v58  ;;  %v1435_v3 = vadd.f32 1.0, %v2367_v62  ;;  %v2101_v58 = vmul.f32 -1.442695, %v1346_v42  ;;  %v2102_v5 = vmul.f32 -1.442695, %v1347_v56 }
 0x2a0   : > { %v2371_v6 = vpop.eup %2370  ;;  %2390 = vrcp.f32 %v1436_v63  ;;  %v1438_v60 = vadd.f32 1.0, %v2369_v2  ;;  %v2100_v63 = vmul.f32 -1.442695, %v1345_v48 }
 0x2a1   : > { %v2373_v12 = vpop.eup %2372  ;;  %2392 = vrcp.f32 %v1435_v3  ;;  %v1437_v13 = vadd.f32 1.0, %v2371_v6  ;;  %v2103_v3 = vmul.f32 -1.442695, %v1348_v52 }
 0x2a2   : > { %v2375_v17 = vpop.eup %2374  ;;  %2394 = vrcp.f32 %v1438_v60  ;;  %v1440_v19 = vadd.f32 1.0, %v2373_v12  ;;  %v1229_v12 = vld [vmem:[#allocation2 + $0x58] sm:$0xff] }
 0x2a3   : > { %v2377_v23 = vpop.eup %2376  ;;  %v3030_v24 = vmul.f32 %v2375_v17, %v1220_v7  ;;  %2396 = vrcp.f32 %v1437_v13 }
 0x2a4   : > { %v2379_v28 = vpop.eup %2378  ;;  %v3034_v30 = vmul.f32 %v2377_v23, %v1218_v8  ;;  %2398 = vrcp.f32 %v1440_v19 }
 0x2a5   : > { %v2381_v34 = vpop.eup %2380  ;;  %v1533_v35 = vmul.f32 %v3030_v24, %v3030_v24  ;;  %v3039_v36 = vmul.f32 %v2379_v28, %v1221_v18  ;;  %2400 = vpow2.f32 %v2090_v50 }
 0x2a6   : > { %v2383_v39 = vpop.eup %2382  ;;  %v1531_v40 = vmul.f32 %v3034_v30, %v3034_v30  ;;  %v3044_v41 = vmul.f32 %v2381_v34, %v1219_v25  ;;  %2402 = vpow2.f32 %v2093_v0 }
 0x2a7   : > { %v2385_v45 = vpop.eup %2384  ;;  %1561 = vadd.xlane.f32.xlu1 %v1533_v35  ;;  %v1534_v46 = vmul.f32 %v3039_v36, %v3039_v36  ;;  %v3049_v47 = vmul.f32 %v2383_v39, %v1223_v31  ;;  %2404 = vpow2.f32 %v2092_v44 }
 0x2a8   : > { %v2387_v29 = vpop.eup %2386  ;;  %1557 = vadd.xlane.f32.xlu0 %v1531_v40  ;;  %v1532_v49 = vmul.f32 %v3044_v41, %v3044_v41  ;;  %v3054_v50 = vmul.f32 %v2385_v45, %v1222_v37  ;;  %2406 = vpow2.f32 %v2095_v9 }
 0x2a9   : > { %v2389_v53 = vpop.eup %2388  ;;  %2408 = vpow2.f32 %v2094_v14  ;;  %v1536_v61 = vmul.f32 %v3049_v47, %v3049_v47  ;;  %v3060_v62 = vmul.f32 %v2387_v29, %v1225_v51  ;;  %v1230_v29 = vld [vmem:[#allocation2 + $0x60] sm:$0xff] }
 0x2aa   : > { %v2391_v57 = vpop.eup %2390  ;;  %2410 = vpow2.f32 %v2097_v15  ;;  %v1535_v1 = vmul.f32 %v3054_v50, %v3054_v50  ;;  %v3064_v2 = vmul.f32 %v2389_v53, %v1224_v54  ;;  %v1228_v15 = vld [vmem:[#allocation2 + $0x50] sm:$0xff]  ;;  %v1233_v53 = vld [vmem:[#allocation2 + $0x78] sm:$0xff] }
 0x2ab   : > { %v2393_v59 = vpop.eup %2392  ;;  %1563 = vadd.xlane.f32.xlu1 %v1534_v46  ;;  %2412 = vpow2.f32 %v2096_v20  ;;  %v1538_v8 = vmul.f32 %v3060_v62, %v3060_v62  ;;  %v3068_v60 = vmul.f32 %v2391_v57, %v1227_v43 }
 0x2ac   : > { %v2395_v0 = vpop.eup %2394  ;;  %1559 = vadd.xlane.f32.xlu0 %v1532_v49  ;;  %2414 = vpow2.f32 %v2099_v32  ;;  %v1537_v10 = vmul.f32 %v3064_v2, %v3064_v2  ;;  %v3072_v11 = vmul.f32 %v2393_v59, %v1226_v4  ;;  %v1235_v59 = vld [vmem:[#allocation2 + $0x88] sm:$0xff] }
 0x2ad   : > { %v2397_v44 = vpop.eup %2396  ;;  %2416 = vpow2.f32 %v2098_v55  ;;  %v1540_v20 = vmul.f32 %v3068_v60, %v3068_v60  ;;  %v3076_v21 = vmul.f32 %v2395_v0, %v1229_v12  ;;  %v1232_v55 = vld [vmem:[#allocation2 + $0x70] sm:$0xff]  ;;  %v1234_v0 = vld [vmem:[#allocation2 + $0x80] sm:$0xff] }
 0x2ae   : > { %v2399_v6 = vpop.eup %2398  ;;  %2418 = vpow2.f32 %v2101_v58  ;;  %v1539_v25 = vmul.f32 %v3072_v11, %v3072_v11  ;;  %v3080_v26 = vmul.f32 %v2397_v44, %v1228_v15 }
 0x2af   : > { %v2401_v7 = vpop.eup %2400  ;;  %1567 = vadd.xlane.f32.xlu1 %v1536_v61  ;;  %2420 = vpow2.f32 %v2100_v63  ;;  %v1542_v37 = vmul.f32 %v3076_v21, %v3076_v21  ;;  %v3084_v38 = vmul.f32 %v2399_v6, %v1231_v27 }
 0x2b0   : > { %v2403_v9 = vpop.eup %2402  ;;  %1565 = vadd.xlane.f32.xlu0 %v1535_v1  ;;  %v1439_v13 = vadd.f32 1.0, %v2401_v7  ;;  %2422 = vpow2.f32 %v2103_v3  ;;  %v1541_v42 = vmul.f32 %v3080_v26, %v3080_v26  ;;  %v1237_v7 = vld [vmem:[#allocation2 + $0x98] sm:$0xff] }
 0x2b1   : > { %v2405_v14 = vpop.eup %2404  ;;  %v1442_v16 = vadd.f32 1.0, %v2403_v9  ;;  %2424 = vpow2.f32 %v2102_v5  ;;  %v1544_v52 = vmul.f32 %v3084_v38, %v3084_v38 }
 0x2b2   : > { %v2407_v17 = vpop.eup %2406  ;;  %2426 = vrcp.f32 %v1439_v13  ;;  %v1441_v18 = vadd.f32 1.0, %v2405_v14  ;;  %v1236_v14 = vld [vmem:[#allocation2 + $0x90] sm:$0xff] }
 0x2b3   : > { %v2409_v19 = vpop.eup %2408  ;;  %1571 = vadd.xlane.f32.xlu1 %v1538_v8  ;;  %2428 = vrcp.f32 %v1442_v16  ;;  %v1444_v22 = vadd.f32 1.0, %v2407_v17 }
 0x2b4   : > { %v2411_v23 = vpop.eup %2410  ;;  %1569 = vadd.xlane.f32.xlu0 %v1537_v10  ;;  %2430 = vrcp.f32 %v1441_v18  ;;  %v1443_v28 = vadd.f32 1.0, %v2409_v19  ;;  %v1239_v18 = vld [vmem:[#allocation2 + $0xa8] sm:$0xff] }
 0x2b5   : > { %v2413_v31 = vpop.eup %2412  ;;  %2432 = vrcp.f32 %v1444_v22  ;;  %v1446_v32 = vadd.f32 1.0, %v2411_v23  ;;  %v1238_v23 = vld [vmem:[#allocation2 + $0xa0] sm:$0xff] }
 0x2b6   : > { %v2415_v33 = vpop.eup %2414  ;;  %2434 = vrcp.f32 %v1443_v28  ;;  %v1445_v34 = vadd.f32 1.0, %v2413_v31  ;;  %v1241_v31 = vld [vmem:[#allocation2 + $0xb8] sm:$0xff] }
 0x2b7   : > { %v2417_v35 = vpop.eup %2416  ;;  %1575 = vadd.xlane.f32.xlu1 %v1540_v20  ;;  %2436 = vrcp.f32 %v1446_v32  ;;  %v1448_v39 = vadd.f32 1.0, %v2415_v33 }
 0x2b8   : > { %v2419_v40 = vpop.eup %2418  ;;  %1573 = vadd.xlane.f32.xlu0 %v1539_v25  ;;  %2438 = vrcp.f32 %v1445_v34  ;;  %v1447_v45 = vadd.f32 1.0, %v2417_v35  ;;  %v1240_v35 = vld [vmem:[#allocation2 + $0xb0] sm:$0xff] }
 0x2b9   : > { %v2421_v46 = vpop.eup %2420  ;;  %2440 = vrcp.f32 %v1448_v39  ;;  %v1450_v49 = vadd.f32 1.0, %v2419_v40 }
 0x2ba   : > { %v2423_v48 = vpop.eup %2422  ;;  %2442 = vrcp.f32 %v1447_v45  ;;  %v1449_v56 = vadd.f32 1.0, %v2421_v46 }
 0x2bb   : > { %v2425_v51 = vpop.eup %2424  ;;  %1579 = vadd.xlane.f32.xlu1 %v1542_v37  ;;  %2444 = vrcp.f32 %v1450_v49  ;;  %v1452_v1 = vadd.f32 1.0, %v2423_v48 }
 0x2bc   : > { %v2427_v54 = vpop.eup %2426  ;;  %1577 = vadd.xlane.f32.xlu0 %v1541_v42  ;;  %2446 = vrcp.f32 %v1449_v56  ;;  %v1451_v8 = vadd.f32 1.0, %v2425_v51  ;;  %v1243_v42 = vld [vmem:[#allocation2 + $0xc8] sm:$0xff] }
 0x2bd   : > { %v2429_v57 = vpop.eup %2428  ;;  %v3090_v58 = vmul.f32 %v2427_v54, %v1230_v29  ;;  %2448 = vrcp.f32 %v1452_v1  ;;  %v1242_v29 = vld [vmem:[#allocation2 + $0xc0] sm:$0xff] }
 0x2be   : > { %v2431_v61 = vpop.eup %2430  ;;  %v3092_v63 = vmul.f32 %v2429_v57, %v1233_v53  ;;  %2450 = vrcp.f32 %v1451_v8 }
 0x2bf   : > { %v2433_v43 = vpop.eup %2432  ;;  %1583 = vadd.xlane.f32.xlu1 %v1544_v52  ;;  %v1543_v3 = vmul.f32 %v3090_v58, %v3090_v58  ;;  %v3096_v44 = vmul.f32 %v2431_v61, %v1232_v55 }
 0x2c0   : > { %v2435_v4 = vpop.eup %2434  ;;  %v1546_v5 = vmul.f32 %v3092_v63, %v3092_v63  ;;  %v3100_v6 = vmul.f32 %v2433_v43, %v1235_v59 }
 0x2c1   : > { %v2437_v9 = vpop.eup %2436  ;;  %1581 = vadd.xlane.f32.xlu0 %v1543_v3  ;;  %v1545_v10 = vmul.f32 %v3096_v44, %v3096_v44  ;;  %v3104_v12 = vmul.f32 %v2435_v4, %v1234_v0 }
 0x2c2   : > { %v2439_v13 = vpop.eup %2438  ;;  %v1548_v15 = vmul.f32 %v3100_v6, %v3100_v6  ;;  %v3108_v16 = vmul.f32 %v2437_v9, %v1237_v7 }
 0x2c3   : > { %1587 = vadd.xlane.f32.xlu1 %v1546_v5  ;;  %v2441_v17 = vpop.eup %2440  ;;  %v1547_v19 = vmul.f32 %v3104_v12, %v3104_v12  ;;  %v3112_v20 = vmul.f32 %v2439_v13, %v1236_v14 }
 0x2c4   : > { %v2443_v22 = vpop.eup %2442  ;;  %v1550_v25 = vmul.f32 %v3108_v16, %v3108_v16  ;;  %v3116_v27 = vmul.f32 %v2441_v17, %v1239_v18 }
 0x2c5   : > { %1585 = vadd.xlane.f32.xlu0 %v1545_v10  ;;  %v2445_v28 = vpop.eup %2444  ;;  %v1549_v32 = vmul.f32 %v3112_v20, %v3112_v20  ;;  %v3120_v33 = vmul.f32 %v2443_v22, %v1238_v23 }
 0x2c6   : > { %v2447_v34 = vpop.eup %2446  ;;  %v1552_v37 = vmul.f32 %v3116_v27, %v3116_v27  ;;  %v3124_v39 = vmul.f32 %v2445_v28, %v1241_v31 }
 0x2c7   : > { %1591 = vadd.xlane.f32.xlu1 %v1548_v15  ;;  %v2449_v40 = vpop.eup %2448  ;;  %v1551_v45 = vmul.f32 %v3120_v33, %v3120_v33  ;;  %v3128_v46 = vmul.f32 %v2447_v34, %v1240_v35 }
 0x2c8   : > { %v2451_v48 = vpop.eup %2450  ;;  %v1554_v49 = vmul.f32 %v3124_v39, %v3124_v39  ;;  %v1530_v51 = vmul.f32 %v2449_v40, %v1243_v42 }
 0x2c9   : > { %1589 = vadd.xlane.f32.xlu0 %v1547_v19  ;;  %v1553_v52 = vmul.f32 %v3128_v46, %v3128_v46  ;;  %v3134_v53 = vmul.f32 %v2451_v48, %v1242_v29 }
 0x2ca   : > { %v1556_v54 = vmul.f32 %v1530_v51, %v1530_v51 }
 0x2cb   : > { %1595 = vadd.xlane.f32.xlu1 %v1550_v25  ;;  %v1555_v55 = vmul.f32 %v3134_v53, %v3134_v53 }
 0x2cd   : > { %1593 = vadd.xlane.f32.xlu0 %v1549_v32 }
 0x2cf   : > { %1599 = vadd.xlane.f32.xlu1 %v1552_v37 }
 0x2d1   : > { %1597 = vadd.xlane.f32.xlu0 %v1551_v45 }
 0x2d3   : > { %1603 = vadd.xlane.f32.xlu1 %v1554_v49 }
 0x2d5   : > { %1601 = vadd.xlane.f32.xlu0 %v1553_v52 }
 0x2d7   : > { %1607 = vadd.xlane.f32.xlu1 %v1556_v54 }
 0x2d9   : > { %1605 = vadd.xlane.f32.xlu0 %v1555_v55 }
 0x334   : > { %v1562_v56 = vpop.xlane.xlu1 %1561 }
 0x335   : > { %v1611_v57 = vmax.f32 %v1562_v56, 1e-24  ;;  %v1558_v59 = vpop.xlane.xlu0 %1557 }
 0x336   : > { %v1609_v61 = vmax.f32 %v1558_v59, 1e-24 }
 0x337   : > { %2452 = vrsqrt.f32 %v1611_v57 }
 0x338   : > { %2454 = vrsqrt.f32 %v1609_v61  ;;  %v1564_v0 = vpop.xlane.xlu1 %1563 }
 0x339   : > { %v1612_v1 = vmax.f32 %v1564_v0, 1e-24  ;;  %v1560_v43 = vpop.xlane.xlu0 %1559 }
 0x33a   : > { %v1610_v3 = vmax.f32 %v1560_v43, 1e-24 }
 0x33b   : > { %2456 = vrsqrt.f32 %v1612_v1 }
 0x33c   : > { %2458 = vrsqrt.f32 %v1610_v3  ;;  %v1568_v4 = vpop.xlane.xlu1 %1567 }
 0x33d   : > { %v1614_v5 = vmax.f32 %v1568_v4, 1e-24  ;;  %v1566_v7 = vpop.xlane.xlu0 %1565 }
 0x33e   : > { %v1613_v8 = vmax.f32 %v1566_v7, 1e-24 }
 0x33f   : > { %2460 = vrsqrt.f32 %v1614_v5 }
 0x340   : > { %2462 = vrsqrt.f32 %v1613_v8  ;;  %v1572_v9 = vpop.xlane.xlu1 %1571 }
 0x341   : > { %v2453_v10 = vpop.eup %2452  ;;  %v1616_v13 = vmax.f32 %v1572_v9, 1e-24  ;;  %v1570_v14 = vpop.xlane.xlu0 %1569 }
 0x342   : > { %v2455_v15 = vpop.eup %2454  ;;  %v1663_v17 = vmul.f32 %v2453_v10, %v3030_v24  ;;  %v1615_v18 = vmax.f32 %v1570_v14, 1e-24 }
 0x343   : > { %v1661_v19 = vmul.f32 %v2455_v15, %v3034_v30  ;;  %2464 = vrsqrt.f32 %v1616_v13 }
 0x344   : > { %1689 = vst [vmem:[#allocation5 + $0x10] sm:$0xff] %v1663_v17  ;;  %2466 = vrsqrt.f32 %v1615_v18  ;;  %v1576_v22 = vpop.xlane.xlu1 %1575 }
 0x345   : > { %v2457_v23 = vpop.eup %2456  ;;  %1687 = vst [vmem:[#allocation5] sm:$0xff] %v1661_v19  ;;  %v1618_v25 = vmax.f32 %v1576_v22, 1e-24  ;;  %v1574_v28 = vpop.xlane.xlu0 %1573 }
 0x346   : > { %v2459_v31 = vpop.eup %2458  ;;  %v1664_v32 = vmul.f32 %v2457_v23, %v3039_v36  ;;  %v1617_v34 = vmax.f32 %v1574_v28, 1e-24 }
 0x347   : > { %v1662_v35 = vmul.f32 %v2459_v31, %v3044_v41  ;;  %2468 = vrsqrt.f32 %v1618_v25 }
 0x348   : > { %1690 = vst [vmem:[#allocation5 + $0x18] sm:$0xff] %v1664_v32  ;;  %2470 = vrsqrt.f32 %v1617_v34  ;;  %v1580_v24 = vpop.xlane.xlu1 %1579 }
 0x349   : > { %v2461_v37 = vpop.eup %2460  ;;  %1688 = vst [vmem:[#allocation5 + $0x8] sm:$0xff] %v1662_v35  ;;  %v1620_v30 = vmax.f32 %v1580_v24, 1e-24  ;;  %v1578_v40 = vpop.xlane.xlu0 %1577 }
 0x34a   : > { %v2463_v42 = vpop.eup %2462  ;;  %v1666_v45 = vmul.f32 %v2461_v37, %v3049_v47  ;;  %v1619_v48 = vmax.f32 %v1578_v40, 1e-24 }
 0x34b   : > { %v1665_v29 = vmul.f32 %v2463_v42, %v3054_v50  ;;  %2472 = vrsqrt.f32 %v1620_v30 }
 0x34c   : > { %1692 = vst [vmem:[#allocation5 + $0x28] sm:$0xff] %v1666_v45  ;;  %2474 = vrsqrt.f32 %v1619_v48  ;;  %v1584_v36 = vpop.xlane.xlu1 %1583 }
 0x34d   : > { %v2465_v49 = vpop.eup %2464  ;;  %1691 = vst [vmem:[#allocation5 + $0x20] sm:$0xff] %v1665_v29  ;;  %v1622_v41 = vmax.f32 %v1584_v36, 1e-24 }
 0x34e   : > { %v2467_v51 = vpop.eup %2466  ;;  %v1668_v52 = vmul.f32 %v2465_v49, %v3060_v62  ;;  %v1582_v54 = vpop.xlane.xlu0 %1581 }
 0x34f   : > { %v1667_v55 = vmul.f32 %v2467_v51, %v3064_v2  ;;  %2476 = vrsqrt.f32 %v1622_v41  ;;  %v1621_v56 = vmax.f32 %v1582_v54, 1e-24 }
 0x350   : > { %1694 = vst [vmem:[#allocation5 + $0x38] sm:$0xff] %v1668_v52  ;;  %v1588_v47 = vpop.xlane.xlu1 %1587 }
 0x351   : > { %v2469_v57 = vpop.eup %2468  ;;  %1693 = vst [vmem:[#allocation5 + $0x30] sm:$0xff] %v1667_v55  ;;  %2478 = vrsqrt.f32 %v1621_v56  ;;  %v1624_v50 = vmax.f32 %v1588_v47, 1e-24 }
 0x352   : > { %v2471_v59 = vpop.eup %2470  ;;  %v1670_v61 = vmul.f32 %v2469_v57, %v3068_v60  ;;  %v1586_v0 = vpop.xlane.xlu0 %1585 }
 0x353   : > { %v1669_v1 = vmul.f32 %v2471_v59, %v3072_v11  ;;  %2480 = vrsqrt.f32 %v1624_v50  ;;  %v1623_v43 = vmax.f32 %v1586_v0, 1e-24 }
 0x354   : > { %1696 = vst [vmem:[#allocation5 + $0x48] sm:$0xff] %v1670_v61  ;;  %v1592_v62 = vpop.xlane.xlu1 %1591 }
 0x355   : > { %v2473_v3 = vpop.eup %2472  ;;  %1695 = vst [vmem:[#allocation5 + $0x40] sm:$0xff] %v1669_v1  ;;  %2482 = vrsqrt.f32 %v1623_v43  ;;  %v1626_v2 = vmax.f32 %v1592_v62, 1e-24 }
 0x356   : > { %v2475_v4 = vpop.eup %2474  ;;  %v1672_v5 = vmul.f32 %v2473_v3, %v3076_v21  ;;  %v1590_v7 = vpop.xlane.xlu0 %1589 }
 0x357   : > { %v1671_v8 = vmul.f32 %v2475_v4, %v3080_v26  ;;  %2484 = vrsqrt.f32 %v1626_v2  ;;  %v1625_v9 = vmax.f32 %v1590_v7, 1e-24 }
 0x358   : > { %1698 = vst [vmem:[#allocation5 + $0x58] sm:$0xff] %v1672_v5  ;;  %v1596_v60 = vpop.xlane.xlu1 %1595 }
 0x359   : > { %v2477_v10 = vpop.eup %2476  ;;  %1697 = vst [vmem:[#allocation5 + $0x50] sm:$0xff] %v1671_v8  ;;  %2486 = vrsqrt.f32 %v1625_v9  ;;  %v1628_v11 = vmax.f32 %v1596_v60, 1e-24 }
 0x35a   : > { %v1674_v13 = vmul.f32 %v2477_v10, %v3084_v38  ;;  %v1594_v14 = vpop.xlane.xlu0 %1593 }
 0x35b   : > { %v2479_v15 = vpop.eup %2478  ;;  %2488 = vrsqrt.f32 %v1628_v11  ;;  %v1627_v17 = vmax.f32 %v1594_v14, 1e-24 }
 0x35c   : > { %1700 = vst [vmem:[#allocation5 + $0x68] sm:$0xff] %v1674_v13  ;;  %v1673_v21 = vmul.f32 %v2479_v15, %v3090_v58  ;;  %v1600_v18 = vpop.xlane.xlu1 %1599 }
 0x35d   : > { %v2481_v19 = vpop.eup %2480  ;;  %2490 = vrsqrt.f32 %v1627_v17  ;;  %v1630_v26 = vmax.f32 %v1600_v18, 1e-24 }
 0x35e   : > { %1699 = vst [vmem:[#allocation5 + $0x60] sm:$0xff] %v1673_v21  ;;  %v1676_v22 = vmul.f32 %v2481_v19, %v3092_v63  ;;  %v1598_v23 = vpop.xlane.xlu0 %1597 }
 0x35f   : > { %v2483_v25 = vpop.eup %2482  ;;  %2492 = vrsqrt.f32 %v1630_v26  ;;  %v1629_v28 = vmax.f32 %v1598_v23, 1e-24 }
 0x360   : > { %1702 = vst [vmem:[#allocation5 + $0x78] sm:$0xff] %v1676_v22  ;;  %v1675_v38 = vmul.f32 %v2483_v25, %v3096_v44  ;;  %v1604_v31 = vpop.xlane.xlu1 %1603 }
 0x361   : > { %v2485_v32 = vpop.eup %2484  ;;  %2494 = vrsqrt.f32 %v1629_v28  ;;  %v1632_v34 = vmax.f32 %v1604_v31, 1e-24 }
 0x362   : > { %1701 = vst [vmem:[#allocation5 + $0x70] sm:$0xff] %v1675_v38  ;;  %v1678_v58 = vmul.f32 %v2485_v32, %v3100_v6  ;;  %v1602_v35 = vpop.xlane.xlu0 %1601 }
 0x363   : > { %v2487_v24 = vpop.eup %2486  ;;  %2496 = vrsqrt.f32 %v1632_v34  ;;  %v1631_v37 = vmax.f32 %v1602_v35, 1e-24 }
 0x364   : > { %1704 = vst [vmem:[#allocation5 + $0x88] sm:$0xff] %v1678_v58  ;;  %v1677_v63 = vmul.f32 %v2487_v24, %v3104_v12  ;;  %v1608_v30 = vpop.xlane.xlu1 %1607 }
 0x365   : > { %v2489_v40 = vpop.eup %2488  ;;  %2498 = vrsqrt.f32 %v1631_v37  ;;  %v1634_v42 = vmax.f32 %v1608_v30, 1e-24 }
 0x366   : > { %1703 = vst [vmem:[#allocation5 + $0x80] sm:$0xff] %v1677_v63  ;;  %v1680_v44 = vmul.f32 %v2489_v40, %v3108_v16  ;;  %v1606_v45 = vpop.xlane.xlu0 %1605 }
 0x367   : > { %v2491_v48 = vpop.eup %2490  ;;  %2500 = vrsqrt.f32 %v1634_v42  ;;  %v1633_v29 = vmax.f32 %v1606_v45, 1e-24 }
 0x368   : > { %1706 = vst [vmem:[#allocation5 + $0x98] sm:$0xff] %v1680_v44  ;;  %v1679_v6 = vmul.f32 %v2491_v48, %v3112_v20 }
 0x369   : > { %v2493_v36 = vpop.eup %2492  ;;  %2502 = vrsqrt.f32 %v1633_v29 }
 0x36a   : > { %1705 = vst [vmem:[#allocation5 + $0x90] sm:$0xff] %v1679_v6  ;;  %v1682_v49 = vmul.f32 %v2493_v36, %v3116_v27 }
 0x36b   : > { %v2495_v12 = vpop.eup %2494 }
 0x36c   : > { %1708 = vst [vmem:[#allocation5 + $0xa8] sm:$0xff] %v1682_v49  ;;  %v1681_v41 = vmul.f32 %v2495_v12, %v3120_v33 }
 0x36d   : > { %v2497_v51 = vpop.eup %2496 }
 0x36e   : > { %1707 = vst [vmem:[#allocation5 + $0xa0] sm:$0xff] %v1681_v41  ;;  %v1684_v16 = vmul.f32 %v2497_v51, %v3124_v39 }
 0x36f   : > { %v2499_v52 = vpop.eup %2498 }
 0x370   : > { %1710 = vst [vmem:[#allocation5 + $0xb8] sm:$0xff] %v1684_v16  ;;  %v1683_v54 = vmul.f32 %v2499_v52, %v3128_v46 }
 0x371   : > { %v2501_v55 = vpop.eup %2500 }
 0x372   : > { %1709 = vst [vmem:[#allocation5 + $0xb0] sm:$0xff] %v1683_v54 }
 0x373   : > { %v2503_v20 = vpop.eup %2502 }
 0x374   : > { %v1685_v56 = vmul.f32 %v2503_v20, %v3134_v53 }
 0x376   : > { %1711 = vst [vmem:[#allocation5 + $0xc0] sm:$0xff] %v1685_v56 }
 0x377 PF: > { %p2104_p7 = scmp.ne.s32.totalorder %s2041_s27, 1 }
 0x378   : > { %s3165_s9 = smov (!%p2104_p7), 0  }
 0x379   : > { %1719 = sbr.rel (%p2104_p7) target bundleno = 910 (0x38e), region = 64 }
 0x380 LB: >> { %v1841_v27 = vld [vmem:[#allocation5] sm:$0xff]  ;;  %v1843_v33 = vld [vmem:[#allocation5 + $0x8] sm:$0xff]  ;;  %v1845_v39 = vld [vmem:[#allocation5 + $0x10] sm:$0xff]  ;;  %s1835_s9 = sadd.s32 1, %s2546_s9   ;;  %s2546_s9 = sphi %s3165_s9, %s1835_s9  }
 0x381   : >> { %1842 = vst [vmem:[%s3264_s7] sm:$0xff] %v1841_v27  ;;  %1844 = vst [vmem:[%s3264_s7 + $0x8] sm:$0xff] %v1843_v33  ;;  %v1847_v46 = vld [vmem:[#allocation5 + $0x18] sm:$0xff]  ;;  %v1849_v53 = vld [vmem:[#allocation5 + $0x20] sm:$0xff]  ;;  %p1834_p8 = scmp.ge.s32.totalorder %s1835_s9, 1 }
 0x382   : >> { %1846 = vst [vmem:[%s3264_s7 + $0x10] sm:$0xff] %v1845_v39  ;;  %v1851_v47 = vld [vmem:[#allocation5 + $0x28] sm:$0xff]  ;;  %1848 = vst [vmem:[%s3264_s7 + $0x18] sm:$0xff] %v1847_v46  ;;  %v1853_v57 = vld [vmem:[#allocation5 + $0x30] sm:$0xff] }
 0x383   : >> { %1850 = vst [vmem:[%s3264_s7 + $0x20] sm:$0xff] %v1849_v53  ;;  %1852 = vst [vmem:[%s3264_s7 + $0x28] sm:$0xff] %v1851_v47  ;;  %v1855_v50 = vld [vmem:[#allocation5 + $0x38] sm:$0xff]  ;;  %v1857_v59 = vld [vmem:[#allocation5 + $0x40] sm:$0xff] }
 0x384   : >> { %1854 = vst [vmem:[%s3264_s7 + $0x30] sm:$0xff] %v1853_v57  ;;  %1856 = vst [vmem:[%s3264_s7 + $0x38] sm:$0xff] %v1855_v50  ;;  %v1859_v61 = vld [vmem:[#allocation5 + $0x48] sm:$0xff]  ;;  %v1861_v0 = vld [vmem:[#allocation5 + $0x50] sm:$0xff] }
 0x385   : >> { %1858 = vst [vmem:[%s3264_s7 + $0x40] sm:$0xff] %v1857_v59  ;;  %v1863_v1 = vld [vmem:[#allocation5 + $0x58] sm:$0xff]  ;;  %1860 = vst [vmem:[%s3264_s7 + $0x48] sm:$0xff] %v1859_v61  ;;  %v1865_v43 = vld [vmem:[#allocation5 + $0x60] sm:$0xff] }
 0x386   : >> { %1862 = vst [vmem:[%s3264_s7 + $0x50] sm:$0xff] %v1861_v0  ;;  %1864 = vst [vmem:[%s3264_s7 + $0x58] sm:$0xff] %v1863_v1  ;;  %v1867_v62 = vld [vmem:[#allocation5 + $0x68] sm:$0xff]  ;;  %v1869_v3 = vld [vmem:[#allocation5 + $0x70] sm:$0xff] }
 0x387   : >> { %1866 = vst [vmem:[%s3264_s7 + $0x60] sm:$0xff] %v1865_v43  ;;  %1868 = vst [vmem:[%s3264_s7 + $0x68] sm:$0xff] %v1867_v62  ;;  %v1871_v2 = vld [vmem:[#allocation5 + $0x78] sm:$0xff]  ;;  %v1873_v4 = vld [vmem:[#allocation5 + $0x80] sm:$0xff]  ;;  %1837 = sbr.rel (!%p1834_p8) target bundleno = 896 (0x380), region = 154 }
 0x388   : >> { %1870 = vst [vmem:[%s3264_s7 + $0x70] sm:$0xff] %v1869_v3  ;;  %v1875_v5 = vld [vmem:[#allocation5 + $0x88] sm:$0xff]  ;;  %1872 = vst [vmem:[%s3264_s7 + $0x78] sm:$0xff] %v1871_v2  ;;  %v1877_v7 = vld [vmem:[#allocation5 + $0x90] sm:$0xff] }
 0x389   : >> { %1874 = vst [vmem:[%s3264_s7 + $0x80] sm:$0xff] %v1873_v4  ;;  %1876 = vst [vmem:[%s3264_s7 + $0x88] sm:$0xff] %v1875_v5  ;;  %v1879_v8 = vld [vmem:[#allocation5 + $0x98] sm:$0xff]  ;;  %v1881_v9 = vld [vmem:[#allocation5 + $0xa0] sm:$0xff] }
 0x38a   : >> { %1878 = vst [vmem:[%s3264_s7 + $0x90] sm:$0xff] %v1877_v7  ;;  %1880 = vst [vmem:[%s3264_s7 + $0x98] sm:$0xff] %v1879_v8  ;;  %v1883_v60 = vld [vmem:[#allocation5 + $0xa8] sm:$0xff]  ;;  %v1885_v10 = vld [vmem:[#allocation5 + $0xb0] sm:$0xff] }
 0x38b   : >> { %1882 = vst [vmem:[%s3264_s7 + $0xa0] sm:$0xff] %v1881_v9  ;;  %v1887_v11 = vld [vmem:[#allocation5 + $0xb8] sm:$0xff]  ;;  %1884 = vst [vmem:[%s3264_s7 + $0xa8] sm:$0xff] %v1883_v60  ;;  %v1889_v13 = vld [vmem:[#allocation5 + $0xc0] sm:$0xff] }
 0x38c   : >> { %1886 = vst [vmem:[%s3264_s7 + $0xb0] sm:$0xff] %v1885_v10  ;;  %1888 = vst [vmem:[%s3264_s7 + $0xb8] sm:$0xff] %v1887_v11 }
 0x38d   : >> { %1890 = vst [vmem:[%s3264_s7 + $0xc0] sm:$0xff] %v1889_v13 }
 0x38e PF: > { %s17_s26 = sadd.s32 1, %s2542_s26   ;;  %s3265_s24 = smov %s2538_s25 }
 0x38f   : > { %p14_p9 = scmp.ge.s32.totalorder %s17_s26, 4   ;;  %s3266_s25 = smov %s3268_s28 }
 0x391   :  { %16 = sbr.rel (!%p14_p9) target bundleno = 2 (0x2), region = 176 }

</bundles_post_ra>
